<compile_context>
chip_gen: v5e
topology: v5e:2x2
jax: 0.10.0
libtpu: 0.0.40
codegen_flags: <defaults>
</compile_context>

<pallas_src>
import jax
import jax.numpy as jnp
from jax.experimental import pallas as pl
from jax.experimental.pallas import tpu as pltpu

# ---------------- config (small, lane-aligned) ----------------
B = 2              # batch
S = 16             # sequence length
H = 128            # hidden size
NH = 4             # attention heads
HD = H // NH       # head dim
FF = 256           # FFN intermediate size
RANK = 32          # SVD rank for the intermediate dense
LN_EPS = 1e-12


# ---------------- in-kernel helpers (traced inside the kernel, f32) ----------------
def _layernorm(x, gamma, beta):
    mean = jnp.mean(x, axis=-1, keepdims=True)
    var = jnp.mean((x - mean) ** 2, axis=-1, keepdims=True)
    inv = jax.lax.rsqrt(var + LN_EPS)
    return (x - mean) * inv * gamma + beta


def _gelu(x):
    # TODO(synk): reference HF BERT uses erf-GELU; tanh approximation used here
    c = 0.7978845608028654  # sqrt(2/pi)
    return 0.5 * x * (1.0 + jnp.tanh(c * (x + 0.044715 * x * x * x)))


# ---------------- fused SvdBlock kernel (one batch element per grid step) ----------------
def svd_block_kernel(x_ref, nb_ref, wqkv_ref, bqkv_ref, wao_ref, slab_ref,
                     wv_ref, wu_ref, bu_ref, wo_ref, o_ref):
    x = x_ref[0]                                  # (S, H) f32
    s, h = x.shape
    hd = h // NH
    xb = x.astype(jnp.bfloat16)

    # small-parameter slab: [b_ao, ln1_g, ln1_b, b_o, ln2_g, ln2_b, pad, pad]
    slab = slab_ref[...]
    b_ao, ln1_g, ln1_b = slab[0:1, :], slab[1:2, :], slab[2:3, :]
    b_o, ln2_g, ln2_b = slab[3:4, :], slab[4:5, :], slab[5:6, :]

    # ---- fused QKV projection: one fat MXU matmul (H x 3H), single bf16 cast ----
    # (1/sqrt(HD) attention scale is pre-folded into the Q columns/bias)
    qkv = (jnp.dot(xb, wqkv_ref[...], preferred_element_type=jnp.float32)
           + bqkv_ref[...]).astype(jnp.bfloat16)   # (S, 3H) bf16

    neg = nb_ref[0]                               # (1, S) additive mask, precomputed

    # ---- multi-head attention; per-head context collected and concatenated ONCE
    #      into a lane-dense (S, 128) value (no VMEM scratch, no masked stores) ----
    ctx_parts = []
    for hh in range(NH):                          # static unroll over 4 heads
        qh = qkv[:, hh * hd:(hh + 1) * hd]                    # (S, HD) bf16
        kh = qkv[:, h + hh * hd:h + (hh + 1) * hd]            # (S, HD) bf16
        vh = qkv[:, 2 * h + hh * hd:2 * h + (hh + 1) * hd]    # (S, HD) bf16
        sc = jax.lax.dot_general(qh, kh, (((1,), (1,)), ((), ())),
                                 preferred_element_type=jnp.float32) + neg   # (S, S)
        m = jnp.max(sc, axis=-1, keepdims=True)
        e = jnp.exp(sc - m)
        p = e * pl.reciprocal(jnp.sum(e, axis=-1, keepdims=True), approx=True)
        ctx_parts.append(jnp.dot(p.astype(jnp.bfloat16), vh,
                                 preferred_element_type=jnp.float32))         # (S, HD)
    ctx = jnp.concatenate(ctx_parts, axis=-1)     # (S, H) lane-dense, one concat

    # ---- attention output projection + residual + LayerNorm (BertSelfOutput) ----
    attn = (jnp.dot(ctx.astype(jnp.bfloat16), wao_ref[...],
                    preferred_element_type=jnp.float32) + b_ao)
    x1 = _layernorm(x + attn, ln1_g, ln1_b)        # (S, H) f32

    # ---- feed_forward_chunk with SvdLinear intermediate ----
    #   dense_v : x @ (V^T * diag(s))   (H -> RANK; diag(s) folded into weight)
    #   dense_u : @ U^T + bias          (RANK -> FF)
    hsv = jnp.dot(x1.astype(jnp.bfloat16), wv_ref[...],
                  preferred_element_type=jnp.float32)                          # (S, RANK)
    hsu = (jnp.dot(hsv.astype(jnp.bfloat16), wu_ref[...],
                   preferred_element_type=jnp.float32) + bu_ref[...])          # (S, FF)
    hg = _gelu(hsu)
    ff = (jnp.dot(hg.astype(jnp.bfloat16), wo_ref[...],
                  preferred_element_type=jnp.float32) + b_o)                   # (S, H)
    # NOTE: reference feed_forward_chunk applies LayerNorm WITHOUT the residual.
    out = _layernorm(ff, ln2_g, ln2_b)

    o_ref[0] = out


# ---------------- wrapper ----------------
def svd_block_forward(params, hidden_states, attention_mask=None):
    b, s, h = hidden_states.shape
    if attention_mask is None:
        attention_mask = jnp.ones((b, s), jnp.float32)
    # additive attention bias computed once, outside the kernel
    neg_bias = ((1.0 - attention_mask.astype(jnp.float32)) * (-1e4)).reshape(b, 1, s)

    row_map = lambda i: (i, 0, 0)     # per-batch activation blocks
    const2 = lambda i: (0, 0)         # weights: constant block -> VMEM-resident

    return pl.pallas_call(
        svd_block_kernel,
        out_shape=jax.ShapeDtypeStruct((b, s, h), jnp.float32),
        grid_spec=pltpu.PrefetchScalarGridSpec(
            num_scalar_prefetch=0,
            grid=(b,),
            in_specs=[
                pl.BlockSpec((1, s, h), row_map),                  # hidden_states
                pl.BlockSpec((1, 1, s), row_map),                  # additive mask
                pl.BlockSpec(params['w_qkv'].shape, const2),
                pl.BlockSpec(params['b_qkv'].shape, const2),
                pl.BlockSpec(params['w_ao'].shape, const2),
                pl.BlockSpec(params['slab'].shape, const2),
                pl.BlockSpec(params['w_v'].shape, const2),
                pl.BlockSpec(params['w_u'].shape, const2),
                pl.BlockSpec(params['b_u'].shape, const2),
                pl.BlockSpec(params['w_o'].shape, const2),
            ],
            out_specs=pl.BlockSpec((1, s, h), row_map),
        ),
        compiler_params=pltpu.CompilerParams(
            dimension_semantics=("parallel",)),
    )(hidden_states, neg_bias,
      params['w_qkv'], params['b_qkv'], params['w_ao'], params['slab'],
      params['w_v'], params['w_u'], params['b_u'], params['w_o'])


# ---------------- parameter init (deterministic, synthetic) ----------------
def init_params(key):
    keys = iter(jax.random.split(key, 16))

    def w(shape, scale=0.02):
        return jax.random.normal(next(keys), shape, jnp.float32) * scale

    bf16 = lambda a: a.astype(jnp.bfloat16)
    scale = 1.0 / (HD ** 0.5)

    # attention projections (x @ W layout)
    w_q, w_k, w_vattn, w_ao = w((H, H)), w((H, H)), w((H, H)), w((H, H))
    b_q, b_k, b_vattn = w((1, H), 0.01), w((1, H), 0.01), w((1, H), 0.01)
    b_ao, b_o = w((1, H), 0.01), w((1, H), 0.01)
    ln1_g = jnp.ones((1, H), jnp.float32)
    ln1_b = jnp.zeros((1, H), jnp.float32)
    ln2_g = jnp.ones((1, H), jnp.float32)
    ln2_b = jnp.zeros((1, H), jnp.float32)

    # fold 1/sqrt(head_dim) attention scale into the Q projection (f32, pre-cast)
    w_qkv = jnp.concatenate([w_q * scale, w_k, w_vattn], axis=1)      # (H, 3H)
    b_qkv = jnp.concatenate([b_q * scale, b_k, b_vattn], axis=1)      # (1, 3H)

    # SvdLinear: SVD of the original intermediate dense weight (FF, H), rank=RANK
    w_int = w((FF, H), scale=0.05)
    b_int = w((1, FF), 0.01)
    u, sv, vh = jnp.linalg.svd(w_int, full_matrices=False)            # u:(FF,H) sv:(H,) vh:(H,H)
    # dense_v (H -> RANK) with diag(s) of dense_s folded in (f32, before bf16 cast)
    w_v = vh[:RANK, :].T * sv[:RANK][None, :]                         # (H, RANK)
    w_u = u[:, :RANK].T                                               # (RANK, FF)

    # pack the six (1, H) f32 params into one (8, 128) slab (2 padding rows)
    slab = jnp.concatenate([b_ao, ln1_g, ln1_b, b_o, ln2_g, ln2_b,
                            jnp.zeros((2, H), jnp.float32)], axis=0)

    return {
        'w_qkv': bf16(w_qkv), 'b_qkv': b_qkv,
        'w_ao': bf16(w_ao),
        'slab': slab,
        'w_v': bf16(w_v), 'w_u': bf16(w_u), 'b_u': b_int,
        'w_o': bf16(w((FF, H))),
    }


if __name__ == "__main__":
    key = jax.random.PRNGKey(0)
    pkey, xkey = jax.random.split(key)
    params = init_params(pkey)

    hidden_states = jax.random.normal(xkey, (B, S, H), jnp.float32)
    attention_mask = jnp.ones((B, S), jnp.float32).at[1, S - 4:].set(0.0)  # pad last 4 of ex 1

    # TODO(synk): decoder / cross-attention branch, past_key_value caching and
    # output_attentions of the reference forward are not implemented (encoder,
    # eval-mode path only); dropout is the identity in eval mode.
    out = svd_block_forward(params, hidden_states, attention_mask)
    out = jax.block_until_ready(out)
    assert out.shape == (B, S, H)
    assert bool(jnp.all(jnp.isfinite(out)))
    print("KERNEL_OK")
</pallas_src>

<mosaic_0001>
module attributes {stable_mosaic.version = 11 : i64} {
  func.func @svd_block_kernel(%arg0: i32, %arg1: memref<1x16x128xf32, #tpu.memory_space<vmem>>, %arg2: memref<1x1x16xf32, #tpu.memory_space<vmem>>, %arg3: memref<128x384xbf16, #tpu.memory_space<vmem>>, %arg4: memref<1x384xf32, #tpu.memory_space<vmem>>, %arg5: memref<128x128xbf16, #tpu.memory_space<vmem>>, %arg6: memref<8x128xf32, #tpu.memory_space<vmem>>, %arg7: memref<128x32xbf16, #tpu.memory_space<vmem>>, %arg8: memref<32x256xbf16, #tpu.memory_space<vmem>>, %arg9: memref<1x256xf32, #tpu.memory_space<vmem>>, %arg10: memref<256x128xbf16, #tpu.memory_space<vmem>>, %arg11: memref<1x16x128xf32, #tpu.memory_space<vmem>>) attributes {dimension_semantics = [#tpu.dimension_semantics<parallel>], iteration_bounds = array<i64: 2>, scalar_prefetch = 0 : i64, scratch_operands = 0 : i64, tpu.core_type = #tpu.core_type<tc>, window_params = [{transform_indices = @transform_0, window_bounds = array<i64: 1, 16, 128>}, {transform_indices = @transform_1, window_bounds = array<i64: 1, 1, 16>}, {pipeline_mode = #tpu.pipeline_mode<synchronous>, transform_indices = @transform_2, window_bounds = array<i64: 128, 384>}, {pipeline_mode = #tpu.pipeline_mode<synchronous>, transform_indices = @transform_3, window_bounds = array<i64: 1, 384>}, {pipeline_mode = #tpu.pipeline_mode<synchronous>, transform_indices = @transform_4, window_bounds = array<i64: 128, 128>}, {pipeline_mode = #tpu.pipeline_mode<synchronous>, transform_indices = @transform_5, window_bounds = array<i64: 8, 128>}, {pipeline_mode = #tpu.pipeline_mode<synchronous>, transform_indices = @transform_6, window_bounds = array<i64: 128, 32>}, {pipeline_mode = #tpu.pipeline_mode<synchronous>, transform_indices = @transform_7, window_bounds = array<i64: 32, 256>}, {pipeline_mode = #tpu.pipeline_mode<synchronous>, transform_indices = @transform_8, window_bounds = array<i64: 1, 256>}, {pipeline_mode = #tpu.pipeline_mode<synchronous>, transform_indices = @transform_9, window_bounds = array<i64: 256, 128>}, {transform_indices = @transform_10, window_bounds = array<i64: 1, 16, 128>}]} {
    %c0 = arith.constant 0 : index
    %c0_0 = arith.constant 0 : index
    %c0_1 = arith.constant 0 : index
    %0 = vector.load %arg1[%c0, %c0_0, %c0_1] : memref<1x16x128xf32, #tpu.memory_space<vmem>>, vector<1x16x128xf32>
    %1 = vector.shape_cast %0 : vector<1x16x128xf32> to vector<16x128xf32>
    %2 = arith.truncf %1 : vector<16x128xf32> to vector<16x128xbf16>
    %c0_2 = arith.constant 0 : index
    %c0_3 = arith.constant 0 : index
    %3 = vector.load %arg6[%c0_2, %c0_3] : memref<8x128xf32, #tpu.memory_space<vmem>>, vector<8x128xf32>
    %4 = vector.extract_strided_slice %3 {offsets = [0, 0], sizes = [1, 128], strides = [1, 1]} : vector<8x128xf32> to vector<1x128xf32>
    %5 = vector.extract_strided_slice %3 {offsets = [1, 0], sizes = [1, 128], strides = [1, 1]} : vector<8x128xf32> to vector<1x128xf32>
    %6 = vector.extract_strided_slice %3 {offsets = [2, 0], sizes = [1, 128], strides = [1, 1]} : vector<8x128xf32> to vector<1x128xf32>
    %7 = vector.extract_strided_slice %3 {offsets = [3, 0], sizes = [1, 128], strides = [1, 1]} : vector<8x128xf32> to vector<1x128xf32>
    %8 = vector.extract_strided_slice %3 {offsets = [4, 0], sizes = [1, 128], strides = [1, 1]} : vector<8x128xf32> to vector<1x128xf32>
    %9 = vector.extract_strided_slice %3 {offsets = [5, 0], sizes = [1, 128], strides = [1, 1]} : vector<8x128xf32> to vector<1x128xf32>
    %c0_4 = arith.constant 0 : index
    %c0_5 = arith.constant 0 : index
    %10 = vector.load %arg3[%c0_4, %c0_5] : memref<128x384xbf16, #tpu.memory_space<vmem>>, vector<128x384xbf16>
    %cst = arith.constant dense<0.000000e+00> : vector<16x384xf32>
    %11 = tpu.matmul %2, %10, %cst {dimension_numbers = #tpu.dot_dimension_numbers<[1], [0], [0], [1], [0, 0, 1, 1], [], []>} : vector<16x128xbf16>, vector<128x384xbf16>, vector<16x384xf32> -> vector<16x384xf32>
    %c0_6 = arith.constant 0 : index
    %c0_7 = arith.constant 0 : index
    %12 = vector.load %arg4[%c0_6, %c0_7] : memref<1x384xf32, #tpu.memory_space<vmem>>, vector<1x384xf32>
    %13 = vector.broadcast %12 : vector<1x384xf32> to vector<16x384xf32>
    %14 = arith.addf %11, %13 : vector<16x384xf32>
    %15 = arith.truncf %14 : vector<16x384xf32> to vector<16x384xbf16>
    %c0_8 = arith.constant 0 : index
    %c0_9 = arith.constant 0 : index
    %c0_10 = arith.constant 0 : index
    %16 = vector.load %arg2[%c0_8, %c0_9, %c0_10] : memref<1x1x16xf32, #tpu.memory_space<vmem>>, vector<1x1x16xf32>
    %17 = vector.shape_cast %16 : vector<1x1x16xf32> to vector<1x16xf32>
    %18 = vector.extract_strided_slice %15 {offsets = [0, 0], sizes = [16, 32], strides = [1, 1]} : vector<16x384xbf16> to vector<16x32xbf16>
    %19 = vector.extract_strided_slice %15 {offsets = [0, 128], sizes = [16, 32], strides = [1, 1]} : vector<16x384xbf16> to vector<16x32xbf16>
    %20 = vector.extract_strided_slice %15 {offsets = [0, 256], sizes = [16, 32], strides = [1, 1]} : vector<16x384xbf16> to vector<16x32xbf16>
    %cst_11 = arith.constant dense<0.000000e+00> : vector<16x16xf32>
    %21 = tpu.matmul %18, %19, %cst_11 {dimension_numbers = #tpu.dot_dimension_numbers<[1], [1], [0], [0], [0, 0, 1, 0], [], []>} : vector<16x32xbf16>, vector<16x32xbf16>, vector<16x16xf32> -> vector<16x16xf32>
    %22 = vector.broadcast %17 : vector<1x16xf32> to vector<16x16xf32>
    %23 = arith.addf %21, %22 : vector<16x16xf32>
    %cst_12 = arith.constant dense<0xFF800000> : vector<16xf32>
    %24 = vector.multi_reduction <maximumf>, %23, %cst_12 [1] : vector<16x16xf32> to vector<16xf32>
    %25 = vector.shape_cast %24 : vector<16xf32> to vector<16x1xf32>
    %26 = vector.broadcast %25 : vector<16x1xf32> to vector<16x16xf32>
    %27 = arith.subf %23, %26 : vector<16x16xf32>
    %28 = math.exp %27 : vector<16x16xf32>
    %cst_13 = arith.constant dense<0.000000e+00> : vector<16xf32>
    %29 = vector.multi_reduction <add>, %28, %cst_13 [1] : vector<16x16xf32> to vector<16xf32>
    %30 = vector.shape_cast %29 : vector<16xf32> to vector<16x1xf32>
    %31 = tpu.reciprocal %30 {approx = true} : vector<16x1xf32> -> vector<16x1xf32>
    %32 = vector.broadcast %31 : vector<16x1xf32> to vector<16x16xf32>
    %33 = arith.mulf %28, %32 : vector<16x16xf32>
    %34 = arith.truncf %33 : vector<16x16xf32> to vector<16x16xbf16>
    %cst_14 = arith.constant dense<0.000000e+00> : vector<16x32xf32>
    %35 = tpu.matmul %34, %20, %cst_14 {dimension_numbers = #tpu.dot_dimension_numbers<[1], [0], [0], [1], [0, 0, 1, 1], [], []>} : vector<16x16xbf16>, vector<16x32xbf16>, vector<16x32xf32> -> vector<16x32xf32>
    %36 = vector.extract_strided_slice %15 {offsets = [0, 32], sizes = [16, 32], strides = [1, 1]} : vector<16x384xbf16> to vector<16x32xbf16>
    %37 = vector.extract_strided_slice %15 {offsets = [0, 160], sizes = [16, 32], strides = [1, 1]} : vector<16x384xbf16> to vector<16x32xbf16>
    %38 = vector.extract_strided_slice %15 {offsets = [0, 288], sizes = [16, 32], strides = [1, 1]} : vector<16x384xbf16> to vector<16x32xbf16>
    %cst_15 = arith.constant dense<0.000000e+00> : vector<16x16xf32>
    %39 = tpu.matmul %36, %37, %cst_15 {dimension_numbers = #tpu.dot_dimension_numbers<[1], [1], [0], [0], [0, 0, 1, 0], [], []>} : vector<16x32xbf16>, vector<16x32xbf16>, vector<16x16xf32> -> vector<16x16xf32>
    %40 = vector.broadcast %17 : vector<1x16xf32> to vector<16x16xf32>
    %41 = arith.addf %39, %40 : vector<16x16xf32>
    %cst_16 = arith.constant dense<0xFF800000> : vector<16xf32>
    %42 = vector.multi_reduction <maximumf>, %41, %cst_16 [1] : vector<16x16xf32> to vector<16xf32>
    %43 = vector.shape_cast %42 : vector<16xf32> to vector<16x1xf32>
    %44 = vector.broadcast %43 : vector<16x1xf32> to vector<16x16xf32>
    %45 = arith.subf %41, %44 : vector<16x16xf32>
    %46 = math.exp %45 : vector<16x16xf32>
    %cst_17 = arith.constant dense<0.000000e+00> : vector<16xf32>
    %47 = vector.multi_reduction <add>, %46, %cst_17 [1] : vector<16x16xf32> to vector<16xf32>
    %48 = vector.shape_cast %47 : vector<16xf32> to vector<16x1xf32>
    %49 = tpu.reciprocal %48 {approx = true} : vector<16x1xf32> -> vector<16x1xf32>
    %50 = vector.broadcast %49 : vector<16x1xf32> to vector<16x16xf32>
    %51 = arith.mulf %46, %50 : vector<16x16xf32>
    %52 = arith.truncf %51 : vector<16x16xf32> to vector<16x16xbf16>
    %cst_18 = arith.constant dense<0.000000e+00> : vector<16x32xf32>
    %53 = tpu.matmul %52, %38, %cst_18 {dimension_numbers = #tpu.dot_dimension_numbers<[1], [0], [0], [1], [0, 0, 1, 1], [], []>} : vector<16x16xbf16>, vector<16x32xbf16>, vector<16x32xf32> -> vector<16x32xf32>
    %54 = vector.extract_strided_slice %15 {offsets = [0, 64], sizes = [16, 32], strides = [1, 1]} : vector<16x384xbf16> to vector<16x32xbf16>
    %55 = vector.extract_strided_slice %15 {offsets = [0, 192], sizes = [16, 32], strides = [1, 1]} : vector<16x384xbf16> to vector<16x32xbf16>
    %56 = vector.extract_strided_slice %15 {offsets = [0, 320], sizes = [16, 32], strides = [1, 1]} : vector<16x384xbf16> to vector<16x32xbf16>
    %cst_19 = arith.constant dense<0.000000e+00> : vector<16x16xf32>
    %57 = tpu.matmul %54, %55, %cst_19 {dimension_numbers = #tpu.dot_dimension_numbers<[1], [1], [0], [0], [0, 0, 1, 0], [], []>} : vector<16x32xbf16>, vector<16x32xbf16>, vector<16x16xf32> -> vector<16x16xf32>
    %58 = vector.broadcast %17 : vector<1x16xf32> to vector<16x16xf32>
    %59 = arith.addf %57, %58 : vector<16x16xf32>
    %cst_20 = arith.constant dense<0xFF800000> : vector<16xf32>
    %60 = vector.multi_reduction <maximumf>, %59, %cst_20 [1] : vector<16x16xf32> to vector<16xf32>
    %61 = vector.shape_cast %60 : vector<16xf32> to vector<16x1xf32>
    %62 = vector.broadcast %61 : vector<16x1xf32> to vector<16x16xf32>
    %63 = arith.subf %59, %62 : vector<16x16xf32>
    %64 = math.exp %63 : vector<16x16xf32>
    %cst_21 = arith.constant dense<0.000000e+00> : vector<16xf32>
    %65 = vector.multi_reduction <add>, %64, %cst_21 [1] : vector<16x16xf32> to vector<16xf32>
    %66 = vector.shape_cast %65 : vector<16xf32> to vector<16x1xf32>
    %67 = tpu.reciprocal %66 {approx = true} : vector<16x1xf32> -> vector<16x1xf32>
    %68 = vector.broadcast %67 : vector<16x1xf32> to vector<16x16xf32>
    %69 = arith.mulf %64, %68 : vector<16x16xf32>
    %70 = arith.truncf %69 : vector<16x16xf32> to vector<16x16xbf16>
    %cst_22 = arith.constant dense<0.000000e+00> : vector<16x32xf32>
    %71 = tpu.matmul %70, %56, %cst_22 {dimension_numbers = #tpu.dot_dimension_numbers<[1], [0], [0], [1], [0, 0, 1, 1], [], []>} : vector<16x16xbf16>, vector<16x32xbf16>, vector<16x32xf32> -> vector<16x32xf32>
    %72 = vector.extract_strided_slice %15 {offsets = [0, 96], sizes = [16, 32], strides = [1, 1]} : vector<16x384xbf16> to vector<16x32xbf16>
    %73 = vector.extract_strided_slice %15 {offsets = [0, 224], sizes = [16, 32], strides = [1, 1]} : vector<16x384xbf16> to vector<16x32xbf16>
    %74 = vector.extract_strided_slice %15 {offsets = [0, 352], sizes = [16, 32], strides = [1, 1]} : vector<16x384xbf16> to vector<16x32xbf16>
    %cst_23 = arith.constant dense<0.000000e+00> : vector<16x16xf32>
    %75 = tpu.matmul %72, %73, %cst_23 {dimension_numbers = #tpu.dot_dimension_numbers<[1], [1], [0], [0], [0, 0, 1, 0], [], []>} : vector<16x32xbf16>, vector<16x32xbf16>, vector<16x16xf32> -> vector<16x16xf32>
    %76 = vector.broadcast %17 : vector<1x16xf32> to vector<16x16xf32>
    %77 = arith.addf %75, %76 : vector<16x16xf32>
    %cst_24 = arith.constant dense<0xFF800000> : vector<16xf32>
    %78 = vector.multi_reduction <maximumf>, %77, %cst_24 [1] : vector<16x16xf32> to vector<16xf32>
    %79 = vector.shape_cast %78 : vector<16xf32> to vector<16x1xf32>
    %80 = vector.broadcast %79 : vector<16x1xf32> to vector<16x16xf32>
    %81 = arith.subf %77, %80 : vector<16x16xf32>
    %82 = math.exp %81 : vector<16x16xf32>
    %cst_25 = arith.constant dense<0.000000e+00> : vector<16xf32>
    %83 = vector.multi_reduction <add>, %82, %cst_25 [1] : vector<16x16xf32> to vector<16xf32>
    %84 = vector.shape_cast %83 : vector<16xf32> to vector<16x1xf32>
    %85 = tpu.reciprocal %84 {approx = true} : vector<16x1xf32> -> vector<16x1xf32>
    %86 = vector.broadcast %85 : vector<16x1xf32> to vector<16x16xf32>
    %87 = arith.mulf %82, %86 : vector<16x16xf32>
    %88 = arith.truncf %87 : vector<16x16xf32> to vector<16x16xbf16>
    %cst_26 = arith.constant dense<0.000000e+00> : vector<16x32xf32>
    %89 = tpu.matmul %88, %74, %cst_26 {dimension_numbers = #tpu.dot_dimension_numbers<[1], [0], [0], [1], [0, 0, 1, 1], [], []>} : vector<16x16xbf16>, vector<16x32xbf16>, vector<16x32xf32> -> vector<16x32xf32>
    %90 = tpu.concatenate %35, %53, %71, %89 in 1 : vector<16x32xf32>, vector<16x32xf32>, vector<16x32xf32>, vector<16x32xf32> -> vector<16x128xf32>
    %91 = arith.truncf %90 : vector<16x128xf32> to vector<16x128xbf16>
    %c0_27 = arith.constant 0 : index
    %c0_28 = arith.constant 0 : index
    %92 = vector.load %arg5[%c0_27, %c0_28] : memref<128x128xbf16, #tpu.memory_space<vmem>>, vector<128x128xbf16>
    %cst_29 = arith.constant dense<0.000000e+00> : vector<16x128xf32>
    %93 = tpu.matmul %91, %92, %cst_29 {dimension_numbers = #tpu.dot_dimension_numbers<[1], [0], [0], [1], [0, 0, 1, 1], [], []>} : vector<16x128xbf16>, vector<128x128xbf16>, vector<16x128xf32> -> vector<16x128xf32>
    %94 = vector.broadcast %4 : vector<1x128xf32> to vector<16x128xf32>
    %95 = arith.addf %93, %94 : vector<16x128xf32>
    %96 = arith.addf %1, %95 : vector<16x128xf32>
    %cst_30 = arith.constant dense<0.000000e+00> : vector<16xf32>
    %97 = vector.multi_reduction <add>, %96, %cst_30 [1] : vector<16x128xf32> to vector<16xf32>
    %98 = vector.shape_cast %97 : vector<16xf32> to vector<16x1xf32>
    %cst_31 = arith.constant 1.280000e+02 : f32
    %99 = vector.broadcast %cst_31 : f32 to vector<16x1xf32>
    %100 = arith.divf %98, %99 : vector<16x1xf32>
    %101 = vector.broadcast %100 : vector<16x1xf32> to vector<16x128xf32>
    %102 = arith.subf %96, %101 : vector<16x128xf32>
    %103 = arith.mulf %102, %102 : vector<16x128xf32>
    %cst_32 = arith.constant dense<0.000000e+00> : vector<16xf32>
    %104 = vector.multi_reduction <add>, %103, %cst_32 [1] : vector<16x128xf32> to vector<16xf32>
    %105 = vector.shape_cast %104 : vector<16xf32> to vector<16x1xf32>
    %cst_33 = arith.constant 1.280000e+02 : f32
    %106 = vector.broadcast %cst_33 : f32 to vector<16x1xf32>
    %107 = arith.divf %105, %106 : vector<16x1xf32>
    %cst_34 = arith.constant 9.99999996E-13 : f32
    %108 = vector.broadcast %cst_34 : f32 to vector<16x1xf32>
    %109 = arith.addf %107, %108 : vector<16x1xf32>
    %110 = math.rsqrt %109 : vector<16x1xf32>
    %111 = vector.broadcast %100 : vector<16x1xf32> to vector<16x128xf32>
    %112 = arith.subf %96, %111 : vector<16x128xf32>
    %113 = vector.broadcast %110 : vector<16x1xf32> to vector<16x128xf32>
    %114 = arith.mulf %112, %113 : vector<16x128xf32>
    %115 = vector.broadcast %5 : vector<1x128xf32> to vector<16x128xf32>
    %116 = arith.mulf %114, %115 : vector<16x128xf32>
    %117 = vector.broadcast %6 : vector<1x128xf32> to vector<16x128xf32>
    %118 = arith.addf %116, %117 : vector<16x128xf32>
    %119 = arith.truncf %118 : vector<16x128xf32> to vector<16x128xbf16>
    %c0_35 = arith.constant 0 : index
    %c0_36 = arith.constant 0 : index
    %120 = vector.load %arg7[%c0_35, %c0_36] : memref<128x32xbf16, #tpu.memory_space<vmem>>, vector<128x32xbf16>
    %cst_37 = arith.constant dense<0.000000e+00> : vector<16x32xf32>
    %121 = tpu.matmul %119, %120, %cst_37 {dimension_numbers = #tpu.dot_dimension_numbers<[1], [0], [0], [1], [0, 0, 1, 1], [], []>} : vector<16x128xbf16>, vector<128x32xbf16>, vector<16x32xf32> -> vector<16x32xf32>
    %122 = arith.truncf %121 : vector<16x32xf32> to vector<16x32xbf16>
    %c0_38 = arith.constant 0 : index
    %c0_39 = arith.constant 0 : index
    %123 = vector.load %arg8[%c0_38, %c0_39] : memref<32x256xbf16, #tpu.memory_space<vmem>>, vector<32x256xbf16>
    %cst_40 = arith.constant dense<0.000000e+00> : vector<16x256xf32>
    %124 = tpu.matmul %122, %123, %cst_40 {dimension_numbers = #tpu.dot_dimension_numbers<[1], [0], [0], [1], [0, 0, 1, 1], [], []>} : vector<16x32xbf16>, vector<32x256xbf16>, vector<16x256xf32> -> vector<16x256xf32>
    %c0_41 = arith.constant 0 : index
    %c0_42 = arith.constant 0 : index
    %125 = vector.load %arg9[%c0_41, %c0_42] : memref<1x256xf32, #tpu.memory_space<vmem>>, vector<1x256xf32>
    %126 = vector.broadcast %125 : vector<1x256xf32> to vector<16x256xf32>
    %127 = arith.addf %124, %126 : vector<16x256xf32>
    %cst_43 = arith.constant 5.000000e-01 : f32
    %128 = vector.broadcast %cst_43 : f32 to vector<16x256xf32>
    %129 = arith.mulf %128, %127 : vector<16x256xf32>
    %cst_44 = arith.constant 4.471500e-02 : f32
    %130 = vector.broadcast %cst_44 : f32 to vector<16x256xf32>
    %131 = arith.mulf %130, %127 : vector<16x256xf32>
    %132 = arith.mulf %131, %127 : vector<16x256xf32>
    %133 = arith.mulf %132, %127 : vector<16x256xf32>
    %134 = arith.addf %127, %133 : vector<16x256xf32>
    %cst_45 = arith.constant 0.797884583 : f32
    %135 = vector.broadcast %cst_45 : f32 to vector<16x256xf32>
    %136 = arith.mulf %135, %134 : vector<16x256xf32>
    %137 = math.tanh %136 : vector<16x256xf32>
    %cst_46 = arith.constant 1.000000e+00 : f32
    %138 = vector.broadcast %cst_46 : f32 to vector<16x256xf32>
    %139 = arith.addf %138, %137 : vector<16x256xf32>
    %140 = arith.mulf %129, %139 : vector<16x256xf32>
    %141 = arith.truncf %140 : vector<16x256xf32> to vector<16x256xbf16>
    %c0_47 = arith.constant 0 : index
    %c0_48 = arith.constant 0 : index
    %142 = vector.load %arg10[%c0_47, %c0_48] : memref<256x128xbf16, #tpu.memory_space<vmem>>, vector<256x128xbf16>
    %cst_49 = arith.constant dense<0.000000e+00> : vector<16x128xf32>
    %143 = tpu.matmul %141, %142, %cst_49 {dimension_numbers = #tpu.dot_dimension_numbers<[1], [0], [0], [1], [0, 0, 1, 1], [], []>} : vector<16x256xbf16>, vector<256x128xbf16>, vector<16x128xf32> -> vector<16x128xf32>
    %144 = vector.broadcast %7 : vector<1x128xf32> to vector<16x128xf32>
    %145 = arith.addf %143, %144 : vector<16x128xf32>
    %cst_50 = arith.constant dense<0.000000e+00> : vector<16xf32>
    %146 = vector.multi_reduction <add>, %145, %cst_50 [1] : vector<16x128xf32> to vector<16xf32>
    %147 = vector.shape_cast %146 : vector<16xf32> to vector<16x1xf32>
    %cst_51 = arith.constant 1.280000e+02 : f32
    %148 = vector.broadcast %cst_51 : f32 to vector<16x1xf32>
    %149 = arith.divf %147, %148 : vector<16x1xf32>
    %150 = vector.broadcast %149 : vector<16x1xf32> to vector<16x128xf32>
    %151 = arith.subf %145, %150 : vector<16x128xf32>
    %152 = arith.mulf %151, %151 : vector<16x128xf32>
    %cst_52 = arith.constant dense<0.000000e+00> : vector<16xf32>
    %153 = vector.multi_reduction <add>, %152, %cst_52 [1] : vector<16x128xf32> to vector<16xf32>
    %154 = vector.shape_cast %153 : vector<16xf32> to vector<16x1xf32>
    %cst_53 = arith.constant 1.280000e+02 : f32
    %155 = vector.broadcast %cst_53 : f32 to vector<16x1xf32>
    %156 = arith.divf %154, %155 : vector<16x1xf32>
    %cst_54 = arith.constant 9.99999996E-13 : f32
    %157 = vector.broadcast %cst_54 : f32 to vector<16x1xf32>
    %158 = arith.addf %156, %157 : vector<16x1xf32>
    %159 = math.rsqrt %158 : vector<16x1xf32>
    %160 = vector.broadcast %149 : vector<16x1xf32> to vector<16x128xf32>
    %161 = arith.subf %145, %160 : vector<16x128xf32>
    %162 = vector.broadcast %159 : vector<16x1xf32> to vector<16x128xf32>
    %163 = arith.mulf %161, %162 : vector<16x128xf32>
    %164 = vector.broadcast %8 : vector<1x128xf32> to vector<16x128xf32>
    %165 = arith.mulf %163, %164 : vector<16x128xf32>
    %166 = vector.broadcast %9 : vector<1x128xf32> to vector<16x128xf32>
    %167 = arith.addf %165, %166 : vector<16x128xf32>
    %c0_55 = arith.constant 0 : index
    %c0_56 = arith.constant 0 : index
    %c0_57 = arith.constant 0 : index
    %168 = vector.load %arg11[%c0_55, %c0_56, %c0_57] : memref<1x16x128xf32, #tpu.memory_space<vmem>>, vector<1x16x128xf32>
    %169 = vector.shape_cast %168 : vector<1x16x128xf32> to vector<16x128xf32>
    %170 = vector.shape_cast %167 : vector<16x128xf32> to vector<1x16x128xf32>
    tpu.vector_store %arg11[%c0_55, %c0_56, %c0_57], %170 {strides = array<i32>} : memref<1x16x128xf32, #tpu.memory_space<vmem>>, vector<1x16x128xf32>,
    return
  }
  func.func @transform_0(%arg0: i32) -> (i32, i32, i32) {
    %c0_i32 = arith.constant 0 : i32
    %c0_i32_0 = arith.constant 0 : i32
    %c0_i32_1 = arith.constant 0 : i32
    return %arg0, %c0_i32, %c0_i32_0 : i32, i32, i32
  }
  func.func @transform_1(%arg0: i32) -> (i32, i32, i32) {
    %c0_i32 = arith.constant 0 : i32
    %c0_i32_0 = arith.constant 0 : i32
    %c0_i32_1 = arith.constant 0 : i32
    return %arg0, %c0_i32, %c0_i32_0 : i32, i32, i32
  }
  func.func @transform_2(%arg0: i32) -> (i32, i32) {
    %c0_i32 = arith.constant 0 : i32
    %c0_i32_0 = arith.constant 0 : i32
    %c0_i32_1 = arith.constant 0 : i32
    return %c0_i32, %c0_i32_0 : i32, i32
  }
  func.func @transform_3(%arg0: i32) -> (i32, i32) {
    %c0_i32 = arith.constant 0 : i32
    %c0_i32_0 = arith.constant 0 : i32
    %c0_i32_1 = arith.constant 0 : i32
    return %c0_i32, %c0_i32_0 : i32, i32
  }
  func.func @transform_4(%arg0: i32) -> (i32, i32) {
    %c0_i32 = arith.constant 0 : i32
    %c0_i32_0 = arith.constant 0 : i32
    %c0_i32_1 = arith.constant 0 : i32
    return %c0_i32, %c0_i32_0 : i32, i32
  }
  func.func @transform_5(%arg0: i32) -> (i32, i32) {
    %c0_i32 = arith.constant 0 : i32
    %c0_i32_0 = arith.constant 0 : i32
    %c0_i32_1 = arith.constant 0 : i32
    return %c0_i32, %c0_i32_0 : i32, i32
  }
  func.func @transform_6(%arg0: i32) -> (i32, i32) {
    %c0_i32 = arith.constant 0 : i32
    %c0_i32_0 = arith.constant 0 : i32
    %c0_i32_1 = arith.constant 0 : i32
    return %c0_i32, %c0_i32_0 : i32, i32
  }
  func.func @transform_7(%arg0: i32) -> (i32, i32) {
    %c0_i32 = arith.constant 0 : i32
    %c0_i32_0 = arith.constant 0 : i32
    %c0_i32_1 = arith.constant 0 : i32
    return %c0_i32, %c0_i32_0 : i32, i32
  }
  func.func @transform_8(%arg0: i32) -> (i32, i32) {
    %c0_i32 = arith.constant 0 : i32
    %c0_i32_0 = arith.constant 0 : i32
    %c0_i32_1 = arith.constant 0 : i32
    return %c0_i32, %c0_i32_0 : i32, i32
  }
  func.func @transform_9(%arg0: i32) -> (i32, i32) {
    %c0_i32 = arith.constant 0 : i32
    %c0_i32_0 = arith.constant 0 : i32
    %c0_i32_1 = arith.constant 0 : i32
    return %c0_i32, %c0_i32_0 : i32, i32
  }
  func.func @transform_10(%arg0: i32) -> (i32, i32, i32) {
    %c0_i32 = arith.constant 0 : i32
    %c0_i32_0 = arith.constant 0 : i32
    %c0_i32_1 = arith.constant 0 : i32
    return %arg0, %c0_i32, %c0_i32_0 : i32, i32, i32
  }
}

</mosaic_0001>

<bundles_post_ra>
// kernel: tpu_custom_call.1
= control target key start
LH: loop header
LB: loop body
LE: loop exit
PB: predicated region body
PF: predicated region fallthrough
CT: control target
= control target key end

     0   :  { %s2721_s0 = inlined_call_operand.hbm [shape: f32[2,16,128], index: 0, kind: input, shape index: {}]   ;;  %s2722_s1 = inlined_call_operand.vmem [shape: f32[2,1,16], index: 1, kind: input, shape index: {}]   ;;  %s2723_s2 = inlined_call_operand.hbm [shape: bf16[128,384], index: 2, kind: input, shape index: {}]   ;;  %s2724_s3 = inlined_call_operand.vmem [shape: f32[1,384], index: 3, kind: input, shape index: {}]   ;;  %s2725_s4 = inlined_call_operand.vmem [shape: bf16[128,128], index: 4, kind: input, shape index: {}]   ;;  %s2726_s5 = inlined_call_operand.vmem [shape: f32[8,128], index: 5, kind: input, shape index: {}]   ;;  %s2727_s6 = inlined_call_operand.vmem [shape: bf16[128,32], index: 6, kind: input, shape index: {}]   ;;  %s2728_s7 = inlined_call_operand.hbm [shape: bf16[32,256], index: 7, kind: input, shape index: {}]   ;;  %s2729_s8 = inlined_call_operand.vmem [shape: f32[1,256], index: 8, kind: input, shape index: {}]   ;;  %s2730_s9 = inlined_call_operand.hbm [shape: bf16[256,128], index: 9, kind: input, shape index: {}]   ;;  %s2731_s10 = inlined_call_operand.hbm [shape: f32[2,16,128], index: 10, kind: output, shape index: {}]  }
   0x1   :  { %2734 = sst [smem:[#allocation16_spill]] %s2723_s2 }
   0x2   :  { %2735 = sst [smem:[#allocation17_spill]] %s2728_s7 }
   0x3   :  { %2736 = sst [smem:[#allocation18_spill]] %s2730_s9 }
   0x4   :  { %15 = vsyncpa [#allocation3], 0 }
   0x5   :  { %17 = vsyncpa [#allocation3 + $0x1], 0 }
   0x6   :  { %18 = vsyncpa [#allocation6], 0 }
   0x7   :  { %19 = vsyncpa [#allocation9], 0 }
   0x8   :  { %20 = vsyncpa [#allocation4], 0 }
   0x9   :  { %22 = vsyncpa [#allocation4 + $0x1], 0  ;;  %s2375_s13 = smov 0   ;;  %s2377_s14 = smov 0  }
   0xa   :  { %s2379_s15 = smov 0   ;;  %s2381_s16 = smov 0  }
   0xb LB: > { %s2396_s17 = sadd.s32 4294967295, %s2303_s16   ;;  %s1622_s18 = sadd.s32 4294967294, %s2303_s16   ;;  %s2303_s16 = sphi %s2381_s16, %s2754_s16   ;;  %s2299_s15 = sphi %s2379_s15, %s2753_s15   ;;  %s2295_s14 = sphi %s2377_s14, %s2752_s14   ;;  %s2291_s13 = sphi %s2375_s13, %s2751_s13  }
   0xc   : > { %p48_p0 = scmp.ne.s32.totalorder %s2295_s14, %s2291_s13  ;;  %p49_p1 = scmp.eq.s32.totalorder %s2396_s17, 0 }
   0xd   : > { %p266_p2 = scmp.eq.s32.totalorder %s2396_s17, 1  ;;  %p272_p3 = scmp.eq.s32.totalorder %s1622_s18, 1 }
   0xe   : > { %p2405_p4 = por %p49_p1, %p48_p0  ;;  %p1623_p5 = scmp.ge.s32.totalorder %s2303_s16, 1 }
   0xf   : > { %p2410_p6 = por %p272_p3, %p48_p0  ;;  %p279_p7 = scmp.lt.s32.totalorder %s2303_s16, 3 }
  0x10   : > { %s2739_s2 = sld [smem:[#allocation16_spill]]  ;;  %s2305_s25 = smov [#allocation5]  }
  0x11   : > { %p2418_p8 = pnand %p1623_p5, %p279_p7  ;;  %s292_s26 = sshll.u32 %s2305_s25, 4  ;;  %s293_s26 = int_to_ptr.vmem [resolvable:$true] %s292_s26 }
  0x12   : > { %s2742_s7 = sld [smem:[#allocation17_spill]]  ;;  %s2306_s11 = smov 192  }
  0x13   : > { %p1970_p9 = pneg %p2418_p8  ;;  %s2307_s12 = smov 12  }
  0x14   : > { %s2308_s18 = smov [#allocation7]   ;;  %s2732_s22 = smov 128  }
  0x15   : > { %p2426_p10 = pnand %p1970_p9, %p49_p1  ;;  %s318_s21 = sshll.u32 %s2308_s18, 4  ;;  %s319_s21 = int_to_ptr.vmem [resolvable:$true] %s318_s21 }
  0x16   : > { %s290_s23 = sshll.u32 %s2739_s2, 4  ;;  %s2733_s25 = smov 8   ;;  %s291_s23 = int_to_ptr.hbm [resolvable:$true] %s290_s23 }
  0x17   : > { %1973 = dma.hbm_to_vmem [thread:$0]  (!%p2426_p10), %s291_s23, 3072, %s293_s26, [#allocation6], %s2306_s11, %s2306_s11, %s2307_s12  }
  0x18   : > { %s316_s30 = sshll.u32 %s2742_s7, 4  ;;  %s2743_s9 = sld [smem:[#allocation18_spill]]  ;;  %s317_s30 = int_to_ptr.hbm [resolvable:$true] %s316_s30 }
  0x19   : > { %1976 = dma.hbm_to_vmem [thread:$0]  (!%p2426_p10), %s317_s30, 512, %s319_s21, [#allocation6], %s2732_s22, %s2732_s22, %s2733_s25  }
  0x1a   : > { %s2311_s26 = smov [#allocation8]   ;;  %s2312_s12 = smov 64  }
  0x1b   : > { %s335_s11 = sshll.u32 %s2311_s26, 4  ;;  %s2313_s18 = smov 4   ;;  %s336_s11 = int_to_ptr.vmem [resolvable:$true] %s335_s11 }
  0x1c   : > { %s2447_s2 = sadd.s32 1, %s2303_s16   ;;  %s35_s21 = sadd.s32 1, %s2299_s15 }
  0x1d   : > { %s32_s30 = ssub.s32 %s2303_s16, %s2447_s2  ;;  %p42_p13 = scmp.ne.s32.totalorder %s2299_s15, %s2295_s14 }
  0x1e   : > { %s333_s23 = sshll.u32 %s2743_s9, 4  ;;  %p33_p12 = scmp.eq.s32.totalorder %s32_s30, 0  ;;  %s334_s23 = int_to_ptr.hbm [resolvable:$true] %s333_s23 }
  0x1f   : > { %1979 = dma.hbm_to_vmem [thread:$0]  (!%p2426_p10), %s334_s23, 2048, %s336_s11, [#allocation9], %s2312_s12, %s2312_s12, %s2313_s18  }
  0x20   : > { %p43_p0 = scmp.eq.s32.totalorder %s2303_s16, 0  ;;  %p2460_p3 = por %p266_p2, %p42_p13 }
  0x21   : > { %s2456_s28 = scalar_select %p33_p12, %s2299_s15, %s35_s21  }
  0x22   : > { %p1991_p5 = scmp.lt.s32.totalorder %s2303_s16, 2  ;;  %s349_s26 = sand.u32 1, %s2299_s15  }
  0x23   : > { %2744 = sst [smem:[#allocation15_spill]] %s2456_s28  ;;  %s1892_s22 = sshll.u32 %s2303_s16, 4 }
  0x24   : > { %p44_p7 = por %p43_p0, %p42_p13  ;;  %s1628_s27 = sshll.u32 %s349_s26, 4 }
  0x25   : > { %s358_s12 = scalar_lea.hbm %s2721_s0, %s1892_s22  ;;  %s353_s30 = scalar_lea.vmem [#allocation2], %s1628_s27 }
  0x26   : > { %s359_s18 = sshll.u32 %s358_s12, 4  ;;  %s361_s25 = sshll.u32 %s353_s30, 4  ;;  %s360_s18 = int_to_ptr.hbm [resolvable:$true] %s359_s18  ;;  %s362_s25 = int_to_ptr.vmem [resolvable:$true] %s361_s25 }
  0x27   : > { %p2470_p9 = pnand %p1991_p5, %p44_p7  ;;  %s350_s7 = scalar_lea.sflag [#allocation3], %s349_s26 }
  0x28   : > { %s2199_s9 = sshra.s32 %s360_s18, 4  ;;  %s2206_s27 = scalar_lea.hbm %s2721_s0, 32  ;;  %s2200_s9 = int_to_ptr.hbm [resolvable:$true] %s2199_s9 }
  0x29   : > { %s2201_s28 = scalar_lea.hbm %s2200_s9, 16  ;;  %p2203_p10 = pneg %p2470_p9 }
  0x2a   : > { %p2202_p2 = scmp.ne.s32.totalorder %s2200_s9, %s2201_s28  ;;  %p2207_p0 = scmp.lt.s32.totalorder %s2200_s9, %s2721_s0 }
  0x2b   : > { %p2208_p5 = scmp.lt.s32.totalorder %s2206_s27, %s2201_s28 }
  0x2c   : > { %p2204_p12 = pnand %p2203_p10, %p2202_p2 }
  0x2d   : > { %p2209_p7 = por %p2208_p5, %p2207_p0 }
  0x2e   : > { %p2205_p13 = pneg %p2204_p12 }
  0x30   : > { %p2210_p11 = pnand %p2209_p7, %p2205_p13 }
  0x32   : > { %2213 = shalt.err (!%p2210_p11)
}
  0x33   : > { %s2747_s26 = smov 8   ;;  %s2748_s30 = smov 128  }
  0x34   : > { %1983 = dma.hbm_to_vmem [thread:$0]  (!%p2470_p9), %s360_s18, 256, %s362_s25, %s350_s7, %s2748_s30, %s2748_s30, %s2747_s26  }
  0x35   : > { %379 = sbr.rel (%p2418_p8) target bundleno = 2874 (0xb3a), region = 60  ;;  %s2490_s22 = sand.u32 (!%p2418_p8), 1, %s2295_s14  }
  0x36   : > { %s1632_s9 = sshll.u32 (!%p2418_p8), %s2490_s22, 4  ;;  %s382_s28 = scalar_lea.sflag (!%p2418_p8), [#allocation3], %s2490_s22 }
  0x37   : > { %s2496_s23 = scalar_lea.vmem (!%p2418_p8), [#allocation2], %s1632_s9 }
  0x3a   : > { %2274 = dma.done.wait (%p2405_p4), %s382_s28, 256  }
  0x3b   : > { %2276 = vsyncadd (%p2405_p4), %s382_s28, 4294967040 }
  0x3c   : > { %2278 = dma.done.wait (%p49_p1), [#allocation6], 3584  }
  0x3d   : > { %2280 = vsyncadd (%p49_p1), [#allocation6], 4294963712 }
  0x3e   : > { %2282 = dma.done.wait (%p49_p1), [#allocation9], 2048  }
  0x3f   : > { %2284 = vsyncadd (%p49_p1), [#allocation9], 4294965248  ;;  %v1723_v0 = vld [vmem:[#allocation5 + $0xa8] sm:$0xf]  ;;  %v1915_v1 = vld [vmem:[#allocation5 + $0xb0] sm:$0xf0] }
  0x40   : > { %v1914_v2 = vld [vmem:[#allocation5 + $0xac] sm:$0xf]  ;;  %v1724_v3 = vor.u32 %v1915_v1, %v1723_v0  ;;  %v1725_v4 = vld [vmem:[#allocation5 + $0xb4] sm:$0xf0]  ;;  %v1711_v5 = vld [vmem:[#allocation5 + $0x90] sm:$0xf] }
  0x41   : > { %v1912_v6 = vld [vmem:[#allocation5 + $0x98] sm:$0xf0]  ;;  %v1728_v7 = vor.u32 %v1914_v2, %v1725_v4  ;;  %v1911_v8 = vld [vmem:[#allocation5 + $0x94] sm:$0xf]  ;;  %v1713_v9 = vld [vmem:[#allocation5 + $0x9c] sm:$0xf0] }
  0x42   : > { %617 = vmatpush.bf16.msra.mxu0 %v1724_v3  ;;  %v1712_v10 = vor.u32 %v1912_v6, %v1711_v5  ;;  %v1716_v11 = vor.u32 %v1911_v8, %v1713_v9  ;;  %v1699_v12 = vld [vmem:[#allocation5 + $0x78] sm:$0xf]  ;;  %v1909_v13 = vld [vmem:[#allocation5 + $0x80] sm:$0xf0]  ;;  %v1908_v14 = vld [vmem:[#allocation5 + $0x7c] sm:$0xf] }
  0x43   : > { %631 = vmatpush.bf16.msra.mxu1 %v1728_v7  ;;  %v1701_v15 = vld [vmem:[#allocation5 + $0x84] sm:$0xf0]  ;;  %v1700_v16 = vor.u32 %v1909_v13, %v1699_v12  ;;  %v1687_v18 = vld [vmem:[#allocation5 + $0x60] sm:$0xf]  ;;  %v1906_v19 = vld [vmem:[#allocation5 + $0x68] sm:$0xf0] }
  0x44   : > { %v1704_v17 = vor.u32 %v1908_v14, %v1701_v15  ;;  %v1905_v20 = vld [vmem:[#allocation5 + $0x64] sm:$0xf]  ;;  %v1689_v21 = vld [vmem:[#allocation5 + $0x6c] sm:$0xf0]  ;;  %v1688_v22 = vor.u32 %v1906_v19, %v1687_v18  ;;  %v1675_v23 = vld [vmem:[#allocation5 + $0x48] sm:$0xf] }
  0x45   : > { %v1731_v24 = vld [vmem:[#allocation5 + $0xb0] sm:$0xf]  ;;  %v1916_v25 = vld [vmem:[#allocation5 + $0xb8] sm:$0xf0]  ;;  %v1692_v26 = vor.u32 %v1905_v20, %v1689_v21  ;;  %v1903_v27 = vld [vmem:[#allocation5 + $0x50] sm:$0xf0] }
  0x46   : > { %618 = vmatpush.bf16.msra.mxu0 %v1712_v10  ;;  %v1732_v28 = vor.u32 %v1916_v25, %v1731_v24  ;;  %v1719_v29 = vld [vmem:[#allocation5 + $0x98] sm:$0xf]  ;;  %v1913_v30 = vld [vmem:[#allocation5 + $0xa0] sm:$0xf0]  ;;  %v1902_v31 = vld [vmem:[#allocation5 + $0x4c] sm:$0xf]  ;;  %v1676_v34 = vor.u32 %v1903_v27, %v1675_v23 }
  0x47   : > { %632 = vmatpush.bf16.msra.mxu1 %v1716_v11  ;;  %v1677_v32 = vld [vmem:[#allocation5 + $0x54] sm:$0xf0]  ;;  %v1720_v33 = vor.u32 %v1913_v30, %v1719_v29  ;;  %v1707_v35 = vld [vmem:[#allocation5 + $0x80] sm:$0xf]  ;;  %v1910_v36 = vld [vmem:[#allocation5 + $0x88] sm:$0xf0] }
  0x48   : > { %645 = vmatpush.bf16.msra.mxu2 %v1732_v28  ;;  %v1680_v37 = vor.u32 %v1902_v31, %v1677_v32  ;;  %v1663_v38 = vld [vmem:[#allocation5 + $0x30] sm:$0xf]  ;;  %v1900_v39 = vld [vmem:[#allocation5 + $0x38] sm:$0xf0]  ;;  %v1899_v40 = vld [vmem:[#allocation5 + $0x34] sm:$0xf]  ;;  %v1708_v42 = vor.u32 %v1910_v36, %v1707_v35 }
  0x49   : > { %v1665_v41 = vld [vmem:[#allocation5 + $0x3c] sm:$0xf0]  ;;  %v1664_v43 = vor.u32 %v1900_v39, %v1663_v38  ;;  %v1695_v44 = vld [vmem:[#allocation5 + $0x68] sm:$0xf]  ;;  %v1907_v45 = vld [vmem:[#allocation5 + $0x70] sm:$0xf0] }
  0x4a   : > { %619 = vmatpush.bf16.msra.mxu0 %v1700_v16  ;;  %v1668_v46 = vor.u32 %v1899_v40, %v1665_v41  ;;  %v1651_v47 = vld [vmem:[#allocation5 + $0x18] sm:$0xf]  ;;  %v1897_v48 = vld [vmem:[#allocation5 + $0x20] sm:$0xf0]  ;;  %v1896_v49 = vld [vmem:[#allocation5 + $0x1c] sm:$0xf]  ;;  %v1696_v51 = vor.u32 %v1907_v45, %v1695_v44 }
  0x4b   : > { %633 = vmatpush.bf16.msra.mxu1 %v1704_v17  ;;  %v1653_v50 = vld [vmem:[#allocation5 + $0x24] sm:$0xf0]  ;;  %v1652_v52 = vor.u32 %v1897_v48, %v1651_v47  ;;  %v1683_v53 = vld [vmem:[#allocation5 + $0x50] sm:$0xf]  ;;  %v1904_v54 = vld [vmem:[#allocation5 + $0x58] sm:$0xf0] }
  0x4c   : > { %646 = vmatpush.bf16.msra.mxu2 %v1720_v33  ;;  %v1656_v55 = vor.u32 %v1896_v49, %v1653_v50  ;;  %v1639_v56 = vld [vmem:[#allocation5] sm:$0xf]  ;;  %v1894_v57 = vld [vmem:[#allocation5 + $0x8] sm:$0xf0]  ;;  %v1893_v58 = vld [vmem:[#allocation5 + $0x4] sm:$0xf]  ;;  %v1684_v61 = vor.u32 %v1904_v54, %v1683_v53 }
  0x4d   : > { %v1641_v59 = vld [vmem:[#allocation5 + $0xc] sm:$0xf0]  ;;  %v1640_v62 = vor.u32 %v1894_v57, %v1639_v56  ;;  %v2514_v63 = vld [vmem:[%s2496_s23 + $0x8] sm:$0xff]  ;;  %v1901_v1 = vld [vmem:[#allocation5 + $0x40] sm:$0xf0]  ;;  %p441_p1 = scmp.lt.s32.totalorder %s2396_s17, 1 }
  0x4e   : > { %620 = vmatpush.bf16.msra.mxu0 %v1688_v22  ;;  %v2511_v60 = vld [vmem:[%s2496_s23] sm:$0xff]  ;;  %v1671_v0 = vld [vmem:[#allocation5 + $0x38] sm:$0xf]  ;;  %v1644_v2 = vor.u32 %v1893_v58, %v1641_v59  ;;  %v1898_v6 = vld [vmem:[#allocation5 + $0x28] sm:$0xf0]  ;;  %vm675_vm0 = vcmask 261120  }
  0x4f   : > { %634 = vmatpush.bf16.msra.mxu1 %v1692_v26  ;;  %v447_v3 = vpack.c.bf16 %v2514_v63, %v2511_v60  ;;  %v1672_v4 = vor.u32 %v1901_v1, %v1671_v0  ;;  %v1659_v5 = vld [vmem:[#allocation5 + $0x20] sm:$0xf]  ;;  %v1647_v8 = vld [vmem:[#allocation5 + $0x8] sm:$0xf]  ;;  %v1895_v9 = vld [vmem:[#allocation5 + $0x10] sm:$0xf0] }
  0x50   : > { %647 = vmatpush.bf16.msra.mxu2 %v1708_v42  ;;  %v1660_v7 = vor.u32 %v1898_v6, %v1659_v5  ;;  %v1648_v10 = vor.u32 %v1895_v9, %v1647_v8  ;;  %s2520_s7 = scalar_select %p441_p1, %s2396_s17, 1  ;;  %v481_v11 = vld [vmem:[%s2724_s3] sm:$0x7]  ;;  %vm696_vm1 = vcmask 130048   ;;  %vm970_vm2 = vcmask 523264  }
  0x51   : > { %v483_v14 = vperm.slane %v481_v11, 0  ;;  %v484_v15 = vperm.slane %v481_v11, 1  ;;  %v485_v27 = vperm.slane %v481_v11, 2  ;;  %s2314_s27 = smov 96   ;;  %s2315_s26 = smov 64   ;;  %vm973_vm3 = vcmask 785408  }
  0x52   : > { %621 = vmatpush.bf16.msra.mxu0 %v1676_v34  ;;  %s443_s25 = scalar_lea.vmem %s2722_s1, %s2520_s7  ;;  %s2316_s30 = smov 32  }
  0x53   : > { %635 = vmatpush.bf16.msra.mxu1 %v1680_v37  ;;  %s1953_s12 = sshll.u32 %s2396_s17, 4  ;;  %s440_s23 = scalar_lea.vmem [#allocation10], %s1632_s9 }
  0x54   : > { %648 = vmatpush.bf16.msra.mxu2 %v1696_v51  ;;  %s1507_s28 = scalar_lea.hbm %s2731_s10, %s1953_s12  ;;  %s1508_s7 = sshll.u32 %s440_s23, 4  ;;  %s1509_s7 = int_to_ptr.vmem [resolvable:$true] %s1508_s7 }
  0x55   : > { %s1510_s19 = sshll.u32 %s1507_s28, 4  ;;  %s1496_s17 = scalar_lea.sflag [#allocation4], %s2490_s22  ;;  %s1511_s19 = int_to_ptr.hbm [resolvable:$true] %s1510_s19 }
  0x56   : > { %622 = vmatpush.bf16.msra.mxu0 %v1664_v43  ;;  %v2550_v43 = vld [vmem:[%s443_s25] ss:$0 sm:$0xff]  ;;  %s2243_s24 = sshra.s32 %s1511_s19, 4  ;;  %s2249_s21 = scalar_lea.hbm %s2731_s10, 32  ;;  %s2244_s24 = int_to_ptr.hbm [resolvable:$true] %s2243_s24 }
  0x57   : > { %636 = vmatpush.bf16.msra.mxu1 %v1668_v46  ;;  %s2245_s25 = scalar_lea.hbm %s2244_s24, 16  ;;  %p2250_p9 = scmp.lt.s32.totalorder %s2244_s24, %s2731_s10 }
  0x58   : > { %649 = vmatpush.bf16.msra.mxu2 %v1684_v61  ;;  %p2246_p4 = scmp.ne.s32.totalorder %s2244_s24, %s2245_s25  ;;  %p2251_p2 = scmp.lt.s32.totalorder %s2249_s21, %s2245_s25 }
  0x5a   : > { %623 = vmatpush.bf16.msra.mxu0 %v1652_v52  ;;  %p2247_p8 = pnand %p2246_p4, %p2460_p3  ;;  %p2252_p10 = por %p2251_p2, %p2250_p9 }
  0x5b   : > { %637 = vmatpush.bf16.msra.mxu1 %v1656_v55 }
  0x5c   : > { %650 = vmatpush.bf16.msra.mxu2 %v1672_v4  ;;  %p2248_p11 = pneg %p2247_p8 }
  0x5e   : > { %624 = vmatpush.bf16.msra.mxu0 %v1640_v62  ;;  %p2253_p12 = pnand %p2252_p10, %p2248_p11 }
  0x5f   : > { %638 = vmatpush.bf16.msra.mxu1 %v1644_v2 }
  0x60   : > { %651 = vmatpush.bf16.msra.mxu2 %v1660_v7 }
  0x61   : > { %625 = vmatmul.bf16.vlgmr.msra.gmra.mxu0 %v447_v3 }
  0x62   : > { %639 = vmatmul.bf16.vlgmr.msra.gmra.mxu1 %v447_v3 }
  0x64   : > { %652 = vmatpush.bf16.msra.mxu2 %v1648_v10 }
  0x67   : > { %653 = vmatmul.bf16.vlgmr.msra.gmra.mxu2 %v447_v3 }
  0xde   : > { %v626_v12 = vpop.f32.mrf.mxu0 }
  0xdf   : > { %v640_v13 = vpop.f32.mrf.mxu1  ;;  %v627_v16 = vadd.f32 %v626_v12, %v483_v14 }
  0xe0   : > { %v641_v17 = vadd.f32 %v640_v13, %v484_v15 }
  0xe2   : > { %v659_v21 = vpack.c.bf16 %v641_v17, %v627_v16 }
  0xe4   : > { %v672_v24 = vunpack.c.h.b16 %v659_v21  ;;  %v669_v32 = vunpack.c.l.b16 %v659_v21 }
  0xe6   : > { %v628_v18 = vpop.f32.mrf.mxu0 }
  0xe7   : > { %v629_v19 = vadd.f32 %v628_v18, %v483_v14  ;;  %v642_v20 = vpop.f32.mrf.mxu1 }
  0xe8   : > { %v643_v22 = vadd.f32 %v642_v20, %v484_v15 }
  0xea   : > { %v661_v23 = vpack.c.bf16 %v643_v22, %v629_v19  ;;  %v654_v28 = vpop.f32.mrf.mxu2 }
  0xeb   : > { %v655_v31 = vadd.f32 %v654_v28, %v485_v27 }
  0xec   : > { %v673_v25 = vunpack.c.h.b16 %v661_v23  ;;  %v670_v30 = vunpack.c.l.b16 %v661_v23 }
  0xed   : > { %v660_v34 = vpack.c.bf16 %v655_v31, %v655_v31 }
  0xee   : > { %v2529_v26 = vpack.c.b16 %v673_v25, %v672_v24  ;;  %v2535_v33 = vpack.c.b16 %v670_v30, %v669_v32 }
  0xef   : > { %v722_v37 = vunpack.c.l.b16 %v660_v34 }
  0xf0   : > { %745 = vrot.lane.b32.xlu2 %v2529_v26, %s2314_s27  ;;  %v680_v29 = vsel %vm675_vm0, %v2529_v26, 0 }
  0xf1   : > { %689 = vmatpush.bf16.xpose.msrb.mxu2 %v680_v29 }
  0xf2   : > { %v656_v35 = vpop.f32.mrf.mxu2 }
  0xf3   : > { %v657_v36 = vadd.f32 %v656_v35, %v485_v27 }
  0xf5   : > { %v662_v38 = vpack.c.bf16 %v657_v36, %v657_v36 }
  0xf7   : > { %v723_v39 = vunpack.c.l.b16 %v662_v38 }
  0xf8   : > { %743 = vrot.lane.b32.xlu2 %v2535_v33, %s2314_s27  ;;  %1733 = vmatmul.msk.bf16.vlgmr.msrb.gmra.mxu2 %vm675_vm0, %v2535_v33 }
  0xf9   : > { %v2541_v40 = vpack.c.b16 %v723_v39, %v722_v37 }
  0xfb   : > { %736 = vmatpush.bf16.msra.mxu3 %v2541_v40 }
 0x14a   : > { %v746_v41 = vpop.permute.xlu2 %745 }
 0x14b   : > { %v751_v42 = vsel %vm675_vm0, %v746_v41, 0 }
 0x14c   : > { %760 = vmatpush.bf16.xpose.msrb.mxu3 %v751_v42 }
 0x152   : > { %v744_v5 = vpop.permute.xlu2 %743 }
 0x17b   : > { %v691_v44 = vpop.f32.mrf.mxu2 }
 0x17c   : > { %v692_v45 = vadd.f32 %v2550_v43, %v691_v44 }
 0x17e   : > { %v697_v46 = vsel %vm696_vm1, %v692_v45, -inf }
 0x17f   : > { %698 = vmax.xlane.f32.xlu0 %v697_v46 }
 0x183   : > { %v693_v47 = vpop.f32.mrf.mxu2 }
 0x184   : > { %v694_v48 = vadd.f32 %v2550_v43, %v693_v47 }
 0x186   : > { %v700_v49 = vsel %vm696_vm1, %v694_v48, -inf }
 0x187   : > { %701 = vmax.xlane.f32.xlu0 %v700_v49 }
 0x1f2   : > { %v699_v50 = vpop.xlane.xlu0 %698 }
 0x1f3   : > { %v703_v51 = vsub.f32 %v692_v45, %v699_v50 }
 0x1f5   : > { %v705_v52 = vmul.f32 1.442695, %v703_v51 }
 0x1f7   : > { %2059 = vpow2.f32 %v705_v52 }
 0x1fa   : > { %v702_v53 = vpop.xlane.xlu0 %701 }
 0x1fb   : > { %v704_v54 = vsub.f32 %v694_v48, %v702_v53 }
 0x1fd   : > { %v2060_v55 = vpop.eup %2059  ;;  %v707_v56 = vmul.f32 1.442695, %v704_v54 }
 0x1fe   : > { %v709_v57 = vsel %vm696_vm1, %v2060_v55, 0.0 }
 0x1ff   : > { %2061 = vpow2.f32 %v707_v56  ;;  %710 = vadd.xlane.f32.xlu1 %v709_v57 }
 0x205   : > { %v2062_v58 = vpop.eup %2061 }
 0x206   : > { %v712_v59 = vsel %vm696_vm1, %v2062_v58, 0.0 }
 0x207   : > { %713 = vadd.xlane.f32.xlu1 %v712_v59 }
 0x272   : > { %v711_v61 = vpop.xlane.xlu1 %710 }
 0x273   : > { %2063 = vrcp.f32 %v711_v61 }
 0x279   : > { %v2064_v0 = vpop.eup %2063 }
 0x27a   : > { %v714_v62 = vpop.xlane.xlu1 %713  ;;  %v717_v2 = vmul.f32 %v2064_v0, %v2060_v55 }
 0x27b   : > { %2065 = vrcp.f32 %v714_v62 }
 0x281   : > { %v2066_v1 = vpop.eup %2065 }
 0x282   : > { %v718_v3 = vmul.f32 %v2066_v1, %v2062_v58 }
 0x284   : > { %v719_v4 = vpack.c.bf16 %v718_v3, %v717_v2 }
 0x286   : > { %1734 = vmatmul.msk.bf16.vlgmr.msra.gmra.mxu3 %vm696_vm1, %v719_v4 }
 0x296   : > { %1735 = vmatmul.msk.bf16.vlgmr.msrb.gmra.mxu3 %vm675_vm0, %v744_v5 }
 0x309   : > { %v2560_v6 = vpop.f32.mrf.mxu3 }
 0x311   : > { %v2562_v7 = vpop.f32.mrf.mxu3 }
 0x319   : > { %v762_v8 = vpop.f32.mrf.mxu3 }
 0x31a   : > { %v763_v9 = vadd.f32 %v2550_v43, %v762_v8 }
 0x31c   : > { %v767_v10 = vsel %vm696_vm1, %v763_v9, -inf }
 0x31d   : > { %768 = vmax.xlane.f32.xlu0 %v767_v10 }
 0x321   : > { %v764_v11 = vpop.f32.mrf.mxu3 }
 0x322   : > { %v765_v12 = vadd.f32 %v2550_v43, %v764_v11 }
 0x324   : > { %v770_v13 = vsel %vm696_vm1, %v765_v12, -inf }
 0x325   : > { %771 = vmax.xlane.f32.xlu1 %v770_v13 }
 0x331   : > { %812 = vrot.lane.b32.xlu0 %v2529_v26, %s2315_s26 }
 0x33e   : > { %790 = vrot.lane.b32.xlu1 %v2541_v40, %s2314_s27 }
 0x346   : > { %879 = vrot.lane.b32.xlu1 %v2529_v26, %s2316_s30 }
 0x34e   : > { %877 = vrot.lane.b32.xlu1 %v2535_v33, %s2316_s30 }
 0x390   : > { %v769_v14 = vpop.xlane.xlu0 %768 }
 0x391   : > { %v773_v15 = vsub.f32 %v763_v9, %v769_v14 }
 0x393   : > { %v775_v16 = vmul.f32 1.442695, %v773_v15 }
 0x395   : > { %2067 = vpow2.f32 %v775_v16 }
 0x398   : > { %v772_v17 = vpop.xlane.xlu1 %771 }
 0x399   : > { %v774_v18 = vsub.f32 %v765_v12, %v772_v17 }
 0x39b   : > { %v2068_v19 = vpop.eup %2067  ;;  %v777_v20 = vmul.f32 1.442695, %v774_v18 }
 0x39c   : > { %v779_v21 = vsel %vm696_vm1, %v2068_v19, 0.0 }
 0x39d   : > { %2069 = vpow2.f32 %v777_v20  ;;  %780 = vadd.xlane.f32.xlu2 %v779_v21 }
 0x3a3   : > { %v2070_v22 = vpop.eup %2069  ;;  %v813_v24 = vpop.permute.xlu0 %812 }
 0x3a4   : > { %v782_v23 = vsel %vm696_vm1, %v2070_v22, 0.0  ;;  %v818_v26 = vsel %vm675_vm0, %v813_v24, 0 }
 0x3a5   : > { %783 = vadd.xlane.f32.xlu0 %v782_v23 }
 0x3b0   : > { %v791_v25 = vpop.permute.xlu1 %790 }
 0x3b1   : > { %803 = vmatpush.bf16.msrb.mxu1 %v791_v25 }
 0x3b5   : > { %827 = vmatpush.bf16.xpose.msra.mxu1 %v818_v26 }
 0x3b8   : > { %v880_v27 = vpop.permute.xlu1 %879 }
 0x3b9   : > { %v885_v28 = vsel %vm675_vm0, %v880_v27, 0  ;;  %810 = vrot.lane.b32.xlu0 %v2535_v33, %s2315_s26 }
 0x3ba   : > { %894 = vmatpush.bf16.xpose.msra.mxu3 %v885_v28 }
 0x3c0   : > { %v878_v29 = vpop.permute.xlu1 %877 }
 0x3c1   : > { %1739 = vmatmul.msk.bf16.vlgmr.msra.gmra.mxu3 %vm675_vm0, %v878_v29 }
 0x410   : > { %v781_v30 = vpop.xlane.xlu2 %780 }
 0x411   : > { %2071 = vrcp.f32 %v781_v30 }
 0x417   : > { %v2072_v32 = vpop.eup %2071 }
 0x418   : > { %v784_v31 = vpop.xlane.xlu0 %783  ;;  %v787_v35 = vmul.f32 %v2072_v32, %v2068_v19 }
 0x419   : > { %2073 = vrcp.f32 %v784_v31 }
 0x41f   : > { %v2074_v34 = vpop.eup %2073 }
 0x420   : > { %v788_v36 = vmul.f32 %v2074_v34, %v2070_v22 }
 0x422   : > { %v789_v37 = vpack.c.bf16 %v788_v36, %v787_v35  ;;  %v1924_v36 = vld [vmem:[%s2725_s4 + $0x38] sm:$0xff] }
 0x424   : > { %1736 = vmatmul.msk.bf16.vlgmr.msrb.gmra.mxu1 %vm696_vm1, %v789_v37  ;;  %v1923_v37 = vld [vmem:[%s2725_s4 + $0x30] sm:$0xff] }
 0x425   : > { %1042 = vmatpush.bf16.msrb.mxu1 %v1924_v36 }
 0x429   : > { %1043 = vmatpush.bf16.msrb.mxu1 %v1923_v37 }
 0x42b   : > { %v811_v38 = vpop.permute.xlu0 %810 }
 0x434   : > { %1737 = vmatmul.msk.bf16.vlgmr.msra.gmra.mxu1 %vm675_vm0, %v811_v38  ;;  %v1922_v38 = vld [vmem:[%s2725_s4 + $0x28] sm:$0xff] }
 0x435   : > { %1044 = vmatpush.bf16.msrb.mxu1 %v1922_v38 }
 0x444   : > { %v896_v39 = vpop.f32.mrf.mxu3 }
 0x445   : > { %v897_v33 = vadd.f32 %v2550_v43, %v896_v39  ;;  %v1921_v39 = vld [vmem:[%s2725_s4 + $0x20] sm:$0xff] }
 0x446   : > { %1045 = vmatpush.bf16.msrb.mxu1 %v1921_v39 }
 0x447   : > { %v901_v41 = vsel %vm696_vm1, %v897_v33, -inf }
 0x448   : > { %902 = vmax.xlane.f32.xlu1 %v901_v41  ;;  %v1919_v41 = vld [vmem:[%s2725_s4 + $0x10] sm:$0xff] }
 0x44c   : > { %v898_v49 = vpop.f32.mrf.mxu3 }
 0x44d   : > { %v899_v50 = vadd.f32 %v2550_v43, %v898_v49 }
 0x44f   : > { %v904_v56 = vsel %vm696_vm1, %v899_v50, -inf }
 0x4a1   : > { %v805_v42 = vpop.f32.mrf.mxu1 }
 0x4a9   : > { %v807_v44 = vpop.f32.mrf.mxu1 }
 0x4aa   : > { %v2043_v45 = vpack.i.bf16 %v807_v44, %v805_v42  ;;  %v1918_v42 = vld [vmem:[%s2725_s4 + $0x8] sm:$0xff]  ;;  %v1917_v44 = vld [vmem:[%s2725_s4] sm:$0xff] }
 0x4ac   : > { %2044 = vrot.lane.b32.xlu1 %v2043_v45, %s2316_s30 }
 0x4b1   : > { %v829_v46 = vpop.f32.mrf.mxu1 }
 0x4b2   : > { %v830_v47 = vadd.f32 %v2550_v43, %v829_v46 }
 0x4b4   : > { %v834_v48 = vsel %vm696_vm1, %v830_v47, -inf }
 0x4b5   : > { %835 = vmax.xlane.f32.xlu2 %v834_v48 }
 0x4b9   : > { %v831_v51 = vpop.f32.mrf.mxu1 }
 0x4ba   : > { %v832_v52 = vadd.f32 %v2550_v43, %v831_v51 }
 0x4bb   : > { %v903_v53 = vpop.xlane.xlu1 %902 }
 0x4bc   : > { %v907_v54 = vsub.f32 %v897_v33, %v903_v53  ;;  %v837_v55 = vsel %vm696_vm1, %v832_v52, -inf  ;;  %v1920_v33 = vld [vmem:[%s2725_s4 + $0x18] sm:$0xff] }
 0x4bd   : > { %838 = vmax.xlane.f32.xlu0 %v837_v55  ;;  %905 = vmax.xlane.f32.xlu2 %v904_v56 }
 0x4be   : > { %v909_v57 = vmul.f32 1.442695, %v907_v54  ;;  %1046 = vmatpush.bf16.msrb.mxu1 %v1920_v33 }
 0x4c0   : > { %2075 = vpow2.f32 %v909_v57 }
 0x4c2   : > { %1047 = vmatpush.bf16.msrb.mxu1 %v1919_v41 }
 0x4c6   : > { %v2076_v58 = vpop.eup %2075  ;;  %1048 = vmatpush.bf16.msrb.mxu1 %v1918_v42 }
 0x4c7   : > { %v913_v59 = vsel %vm696_vm1, %v2076_v58, 0.0 }
 0x4c8   : > { %914 = vadd.xlane.f32.xlu2 %v913_v59 }
 0x4ca   : > { %1049 = vmatpush.bf16.msrb.mxu1 %v1917_v44 }
 0x4d1   : > { %857 = vrot.lane.b32.xlu0 %v2541_v40, %s2315_s26 }
 0x51e   : > { %v2045_v45 = vpop.permute.xlu1 %2044 }
 0x51f   : > { %v2047_v46 = vunpack.i.h.bf16 %v2045_v45 }
 0x528   : > { %v836_v61 = vpop.xlane.xlu2 %835 }
 0x529   : > { %v840_v1 = vsub.f32 %v830_v47, %v836_v61  ;;  %v2046_v47 = vunpack.i.l.bf16 %v2045_v45 }
 0x52b   : > { %v842_v2 = vmul.f32 1.442695, %v840_v1  ;;  %v968_v53 = vsel %vm675_vm0, %v2560_v6, %v2046_v47 }
 0x530   : > { %v906_v62 = vpop.xlane.xlu2 %905  ;;  %v839_v3 = vpop.xlane.xlu0 %838 }
 0x531   : > { %v908_v43 = vsub.f32 %v899_v50, %v906_v62  ;;  %v841_v5 = vsub.f32 %v832_v52, %v839_v3  ;;  %v969_v52 = vsel %vm675_vm0, %v2562_v7, %v2047_v46  ;;  %v2637_v62 = vld [vmem:[%s2726_s5] sm:$0xff] }
 0x532   : > { %v1105_v47 = vperm.slane %v2637_v62, 1 }
 0x533   : > { %v911_v0 = vmul.f32 1.442695, %v908_v43  ;;  %v844_v9 = vmul.f32 1.442695, %v841_v5  ;;  %v993_v43 = vperm.slane %v2637_v62, 0 }
 0x535   : > { %2077 = vpow2.f32 %v911_v0 }
 0x536   : > { %2079 = vpow2.f32 %v842_v2 }
 0x537   : > { %2081 = vpow2.f32 %v844_v9 }
 0x53b   : > { %v2078_v4 = vpop.eup %2077  ;;  %v915_v15 = vpop.xlane.xlu2 %914 }
 0x53c   : > { %v916_v8 = vsel %vm696_vm1, %v2078_v4, 0.0  ;;  %v2080_v10 = vpop.eup %2079 }
 0x53d   : > { %917 = vadd.xlane.f32.xlu2 %v916_v8  ;;  %v846_v12 = vsel %vm696_vm1, %v2080_v10, 0.0  ;;  %v2082_v13 = vpop.eup %2081 }
 0x53e   : > { %v849_v14 = vsel %vm696_vm1, %v2082_v13, 0.0 }
 0x543   : > { %v858_v11 = vpop.permute.xlu0 %857 }
 0x544   : > { %870 = vmatpush.bf16.msra.mxu2 %v858_v11 }
 0x545   : > { %847 = vadd.xlane.f32.xlu2 %v846_v12 }
 0x54d   : > { %850 = vadd.xlane.f32.xlu2 %v849_v14 }
 0x565   : > { %924 = vrot.lane.b32.xlu2 %v2541_v40, %s2316_s30 }
 0x5b0   : > { %v918_v16 = vpop.xlane.xlu2 %917 }
 0x5b1   : > { %2083 = vrcp.f32 %v918_v16 }
 0x5b2   : > { %2085 = vrcp.f32 %v915_v15 }
 0x5b7   : > { %v2084_v19 = vpop.eup %2083 }
 0x5b8   : > { %v848_v17 = vpop.xlane.xlu2 %847  ;;  %v2086_v20 = vpop.eup %2085  ;;  %v922_v22 = vmul.f32 %v2084_v19, %v2078_v4  ;;  %v2317_v4 = vmov 128.0   ;;  %v1932_v19 = vld [vmem:[%s2727_s6 + $0x38] sm:$0xff] }
 0x5b9   : > { %2087 = vrcp.f32 %v848_v17  ;;  %v921_v24 = vmul.f32 %v2086_v20, %v2076_v58  ;;  %1176 = vmatpush.bf16.msrb.mxu2 %v1932_v19  ;;  %v1931_v20 = vld [vmem:[%s2727_s6 + $0x30] sm:$0xff]  ;;  %v1940_v19 = vld [vmem:[#allocation8 + $0x18] sm:$0xff] }
 0x5bb   : > { %v923_v40 = vpack.c.bf16 %v922_v22, %v921_v24  ;;  %v1929_v22 = vld [vmem:[%s2727_s6 + $0x20] sm:$0xff]  ;;  %v1927_v24 = vld [vmem:[%s2727_s6 + $0x10] sm:$0xff] }
 0x5bd   : > { %1177 = vmatpush.bf16.msrb.mxu2 %v1931_v20  ;;  %v1946_v20 = vld [vmem:[#allocation8 + $0x48] sm:$0xff] }
 0x5bf   : > { %v2088_v21 = vpop.eup %2087 }
 0x5c0   : > { %v851_v18 = vpop.xlane.xlu2 %850  ;;  %v854_v25 = vmul.f32 %v2088_v21, %v2080_v10  ;;  %v1930_v21 = vld [vmem:[%s2727_s6 + $0x28] sm:$0xff] }
 0x5c1   : > { %2089 = vrcp.f32 %v851_v18  ;;  %1178 = vmatpush.bf16.msrb.mxu2 %v1930_v21  ;;  %v1939_v21 = vld [vmem:[#allocation8 + $0x10] sm:$0xff] }
 0x5c2   : > { %2091 = vrcp.f32 %v2317_v4 }
 0x5c5   : > { %1179 = vmatpush.bf16.msrb.mxu2 %v1929_v22  ;;  %v1195_v22 = vld [vmem:[%s2729_s8] sm:$0x3] }
 0x5c7   : > { %v2090_v23 = vpop.eup %2089 }
 0x5c8   : > { %v855_v26 = vmul.f32 %v2090_v23, %v2082_v13  ;;  %v925_v27 = vpop.permute.xlu2 %924  ;;  %v2092_v5 = vpop.eup %2091  ;;  %v1928_v23 = vld [vmem:[%s2727_s6 + $0x18] sm:$0xff] }
 0x5c9   : > { %937 = vmatpush.bf16.msrb.mxu0 %v925_v27  ;;  %v1063_v8 = vmul.f32 128.0, %v2092_v5  ;;  %vm1067_vm4 = vweird.f32 %v2092_v5  ;;  %1180 = vmatpush.bf16.msrb.mxu2 %v1928_v23  ;;  %v1925_v27 = vld [vmem:[%s2727_s6] sm:$0xff] }
 0x5ca   : > { %v856_v28 = vpack.c.bf16 %v855_v26, %v854_v25  ;;  %v1926_v25 = vld [vmem:[%s2727_s6 + $0x8] sm:$0xff]  ;;  %v1945_v23 = vld [vmem:[#allocation8 + $0x40] sm:$0xff] }
 0x5cb   : > { %v1064_v9 = vsub.f32 1.0, %v1063_v8 }
 0x5cc   : > { %1738 = vmatmul.msk.bf16.vlgmr.msra.gmra.mxu2 %vm696_vm1, %v856_v28  ;;  %1740 = vmatmul.msk.bf16.vlgmr.msrb.gmra.mxu0 %vm696_vm1, %v923_v40 }
 0x5cd   : > { %v1065_v10 = vmul.f32 %v2092_v5, %v1064_v9  ;;  %1181 = vmatpush.bf16.msrb.mxu2 %v1927_v24  ;;  %v1198_v24 = vperm.slane %v1195_v22, 1 }
 0x5cf   : > { %v1066_v11 = vadd.f32 %v2092_v5, %v1065_v10  ;;  %v1952_v10 = vld [vmem:[#allocation8 + $0x78] sm:$0xff] }
 0x5d1   : > { %v2642_v12 = vsel %vm1067_vm4, %v2092_v5, %v1066_v11  ;;  %1182 = vmatpush.bf16.msrb.mxu2 %v1926_v25  ;;  %v1951_v11 = vld [vmem:[#allocation8 + $0x70] sm:$0xff]  ;;  %v1938_v25 = vld [vmem:[#allocation8 + $0x8] sm:$0xff] }
 0x5d5   : > { %1183 = vmatpush.bf16.msrb.mxu2 %v1925_v27 }
 0x649   : > { %v939_v29 = vpop.f32.mrf.mxu0 }
 0x64f   : > { %v872_v30 = vpop.f32.mrf.mxu2 }
 0x651   : > { %v941_v31 = vpop.f32.mrf.mxu0 }
 0x652   : > { %v2053_v32 = vpack.i.bf16 %v941_v31, %v939_v29 }
 0x654   : > { %2054 = vrot.lane.b32.xlu2 %v2053_v32, %s2314_s27 }
 0x657   : > { %v874_v34 = vpop.f32.mrf.mxu2 }
 0x658   : > { %v2048_v35 = vpack.i.bf16 %v874_v34, %v872_v30 }
 0x65a   : > { %2049 = vrot.lane.b32.xlu0 %v2048_v35, %s2315_s26 }
 0x6ae   : > { %v2055_v48 = vpop.permute.xlu2 %2054 }
 0x6af   : > { %v2057_v54 = vunpack.i.h.bf16 %v2055_v48  ;;  %v2056_v55 = vunpack.i.l.bf16 %v2055_v48 }
 0x6cc   : > { %v2050_v49 = vpop.permute.xlu0 %2049 }
 0x6cd   : > { %v2052_v50 = vunpack.i.h.bf16 %v2050_v49  ;;  %v2051_v51 = vunpack.i.l.bf16 %v2050_v49 }
 0x6cf   : > { %v972_v56 = vsel %vm970_vm2, %v969_v52, %v2052_v50  ;;  %v971_v57 = vsel %vm970_vm2, %v968_v53, %v2051_v51  ;;  %v1108_v52 = vperm.slane %v2637_v62, 2 }
 0x6d0   : > { %v974_v58 = vsel %vm973_vm3, %v971_v57, %v2056_v55  ;;  %v975_v59 = vsel %vm973_vm3, %v972_v56, %v2057_v54  ;;  %v1815_v57 = vld [vmem:[#allocation7 + $0x10] sm:$0xf] }
 0x6d1   : > { %v976_v61 = vpack.c.bf16 %v975_v59, %v974_v58  ;;  %v1936_v58 = vld [vmem:[#allocation7 + $0x14] sm:$0xf0]  ;;  %v1935_v59 = vld [vmem:[#allocation7 + $0x14] sm:$0xf] }
 0x6d3   : > { %1050 = vmatmul.bf16.vlgmr.msrb.gmra.mxu1 %v976_v61  ;;  %v1816_v61 = vor.u32 %v1936_v58, %v1815_v57 }
 0x6d5   : > { %1230 = vmatpush.bf16.msrb.mxu3 %v1816_v61 }
 0x750   : > { %v1051_v0 = vpop.f32.mrf.mxu1 }
 0x751   : > { %v1052_v7 = vadd.f32 %v1051_v0, %v993_v43 }
 0x753   : > { %v1056_v1 = vadd.f32 %v1052_v7, %v2511_v60  ;;  %v1807_v7 = vld [vmem:[#allocation7] sm:$0xf] }
 0x755   : > { %1058 = vadd.xlane.f32.xlu0 %v1056_v1 }
 0x758   : > { %v1053_v6 = vpop.f32.mrf.mxu1 }
 0x759   : > { %v1054_v2 = vadd.f32 %v1053_v6, %v993_v43  ;;  %v1817_v43 = vld [vmem:[#allocation7 + $0x18] sm:$0xf0]  ;;  %v1933_v6 = vld [vmem:[#allocation7 + $0x4] sm:$0xf] }
 0x75a   : > { %v1820_v0 = vor.u32 %v1935_v59, %v1817_v43 }
 0x75b   : > { %v1057_v3 = vadd.f32 %v1054_v2, %v2514_v63 }
 0x75c   : > { %1244 = vmatpush.bf16.msra.mxu0 %v1820_v0 }
 0x75d   : > { %1060 = vadd.xlane.f32.xlu1 %v1057_v3 }
 0x7c8   : > { %v1059_v13 = vpop.xlane.xlu0 %1058 }
 0x7c9   : > { %v1069_v14 = vmul.f32 %v2642_v12, %v1059_v13  ;;  %v1944_v13 = vld [vmem:[#allocation8 + $0x38] sm:$0xff] }
 0x7cb   : > { %v1071_v60 = vsub.f32 %v1056_v1, %v1069_v14  ;;  %v1934_v1 = vld [vmem:[#allocation7 + $0x4] sm:$0xf0] }
 0x7cc   : > { %v1808_v2 = vor.u32 %v1934_v1, %v1807_v7  ;;  %v1950_v14 = vld [vmem:[#allocation8 + $0x68] sm:$0xff] }
 0x7cd   : > { %v1073_v15 = vmul.f32 %v1071_v60, %v1071_v60 }
 0x7ce   : > { %1231 = vmatpush.bf16.msrb.mxu3 %v1808_v2 }
 0x7cf   : > { %1075 = vadd.xlane.f32.xlu2 %v1073_v15  ;;  %v1949_v15 = vld [vmem:[#allocation8 + $0x60] sm:$0xff] }
 0x7d0   : > { %v1061_v16 = vpop.xlane.xlu1 %1060 }
 0x7d1   : > { %v1070_v63 = vmul.f32 %v2642_v12, %v1061_v16  ;;  %v1942_v16 = vld [vmem:[#allocation8 + $0x28] sm:$0xff] }
 0x7d2   : > { %1419 = vmatpush.bf16.msra.mxu3 %v1944_v13 }
 0x7d3   : > { %v1072_v17 = vsub.f32 %v1057_v3, %v1070_v63  ;;  %v1809_v3 = vld [vmem:[#allocation7 + $0x8] sm:$0xf0]  ;;  %v1948_v63 = vld [vmem:[#allocation8 + $0x58] sm:$0xff] }
 0x7d4   : > { %v1812_v4 = vor.u32 %v1933_v6, %v1809_v3 }
 0x7d5   : > { %v1074_v18 = vmul.f32 %v1072_v17, %v1072_v17 }
 0x7d6   : > { %1245 = vmatpush.bf16.msra.mxu0 %v1812_v4 }
 0x7d7   : > { %1077 = vadd.xlane.f32.xlu0 %v1074_v18  ;;  %v1947_v18 = vld [vmem:[#allocation8 + $0x50] sm:$0xff] }
 0x7da   : > { %1433 = vmatpush.bf16.msrb.mxu0 %v1952_v10 }
 0x7de   : > { %1434 = vmatpush.bf16.msrb.mxu0 %v1951_v11 }
 0x7e2   : > { %1435 = vmatpush.bf16.msrb.mxu0 %v1950_v14  ;;  %v1322_v14 = vperm.slane %v2637_v62, 3 }
 0x7e6   : > { %1436 = vmatpush.bf16.msrb.mxu0 %v1949_v15 }
 0x7ea   : > { %1437 = vmatpush.bf16.msrb.mxu0 %v1948_v63 }
 0x7ee   : > { %1438 = vmatpush.bf16.msrb.mxu0 %v1947_v18 }
 0x7f2   : > { %1439 = vmatpush.bf16.msrb.mxu0 %v1946_v20 }
 0x7f6   : > { %1440 = vmatpush.bf16.msrb.mxu0 %v1945_v23 }
 0x842   : > { %v1076_v26 = vpop.xlane.xlu2 %1075 }
 0x843   : > { %v1079_v28 = vmul.f32 %v1076_v26, %v2642_v12 }
 0x845   : > { %v1081_v40 = vadd.f32 1e-12, %v1079_v28  ;;  %v1937_v28 = vld [vmem:[#allocation8] sm:$0xff] }
 0x847   : > { %2093 = vrsqrt.f32 %v1081_v40  ;;  %vm1089_vm6 = vweird.f32 %v1081_v40 }
 0x84a   : > { %v1078_v29 = vpop.xlane.xlu0 %1077 }
 0x84b   : > { %v1080_v30 = vmul.f32 %v1078_v29, %v2642_v12  ;;  %v1197_v29 = vperm.slane %v1195_v22, 0 }
 0x84d   : > { %v2094_v31 = vpop.eup %2093  ;;  %v1082_v32 = vadd.f32 1e-12, %v1080_v30 }
 0x84e   : > { %v1084_v34 = vmul.f32 %v2094_v31, %v1081_v40  ;;  %vm1090_vm5 = vweird.f32 %v2094_v31 }
 0x84f   : > { %2095 = vrsqrt.f32 %v1082_v32  ;;  %vm1091_vm7 = vmor %vm1089_vm6, %vm1090_vm5  ;;  %vm1099_vm9 = vweird.f32 %v1082_v32 }
 0x850   : > { %v1085_v35 = vmul.f32 %v2094_v31, %v1084_v34 }
 0x852   : > { %v1086_v36 = vmul.f32 0.5, %v1085_v35 }
 0x854   : > { %v1087_v37 = vsub.f32 1.5, %v1086_v36 }
 0x855   : > { %v2096_v38 = vpop.eup %2095 }
 0x856   : > { %v1088_v39 = vmul.f32 %v2094_v31, %v1087_v37  ;;  %v1094_v33 = vmul.f32 %v2096_v38, %v1082_v32  ;;  %vm1100_vm8 = vweird.f32 %v2096_v38 }
 0x857   : > { %vm1101_vm10 = vmor %vm1099_vm9, %vm1100_vm8 }
 0x858   : > { %v1095_v41 = vmul.f32 %v2096_v38, %v1094_v33  ;;  %v1092_v42 = vsel %vm1091_vm7, %v2094_v31, %v1088_v39 }
 0x859   : > { %v1103_v46 = vmul.f32 %v1092_v42, %v1071_v60  ;;  %v1943_v60 = vld [vmem:[#allocation8 + $0x30] sm:$0xff] }
 0x85a   : > { %v1096_v44 = vmul.f32 0.5, %v1095_v41  ;;  %1420 = vmatpush.bf16.msra.mxu3 %v1943_v60 }
 0x85b   : > { %v1106_v51 = vmul.f32 %v1105_v47, %v1103_v46 }
 0x85c   : > { %v1097_v45 = vsub.f32 1.5, %v1096_v44 }
 0x85d   : > { %v1109_v54 = vadd.f32 %v1108_v52, %v1106_v51 }
 0x85e   : > { %v1098_v48 = vmul.f32 %v2096_v38, %v1097_v45  ;;  %1421 = vmatpush.bf16.msra.mxu3 %v1942_v16 }
 0x860   : > { %v1102_v49 = vsel %vm1101_vm10, %v2096_v38, %v1098_v48 }
 0x861   : > { %v1104_v50 = vmul.f32 %v1102_v49, %v1072_v17  ;;  %v1941_v17 = vld [vmem:[#allocation8 + $0x20] sm:$0xff] }
 0x862   : > { %1422 = vmatpush.bf16.msra.mxu3 %v1941_v17 }
 0x863   : > { %v1107_v53 = vmul.f32 %v1105_v47, %v1104_v50 }
 0x865   : > { %v1110_v55 = vadd.f32 %v1108_v52, %v1107_v53 }
 0x866   : > { %1423 = vmatpush.bf16.msra.mxu3 %v1940_v19 }
 0x867   : > { %v1111_v56 = vpack.c.bf16 %v1110_v55, %v1109_v54 }
 0x869   : > { %1184 = vmatmul.bf16.vlgmr.msrb.gmra.mxu2 %v1111_v56 }
 0x86a   : > { %1424 = vmatpush.bf16.msra.mxu3 %v1939_v21 }
 0x86e   : > { %1425 = vmatpush.bf16.msra.mxu3 %v1938_v25 }
 0x872   : > { %1426 = vmatpush.bf16.msra.mxu3 %v1937_v28 }
 0x8ec   : > { %v1185_v5 = vpop.f32.mrf.mxu2 }
 0x8f4   : > { %v1187_v8 = vpop.f32.mrf.mxu2 }
 0x8f5   : > { %v1190_v9 = vpack.c.bf16 %v1187_v8, %v1185_v5 }
 0x8f7   : > { %1821 = vmatmul.msk.bf16.vlgmr.msrb.gmra.mxu3 %vm675_vm0, %v1190_v9  ;;  %1822 = vmatmul.msk.bf16.vlgmr.msra.gmra.mxu0 %vm675_vm0, %v1190_v9 }
 0x974   : > { %v1247_v26 = vpop.f32.mrf.mxu0 }
 0x975   : > { %v1248_v27 = vadd.f32 %v1247_v26, %v1198_v24 }
 0x977   : > { %v1257_v40 = vmul.f32 0.044715, %v1248_v27  ;;  %v1253_v61 = vmul.f32 0.5, %v1248_v27 }
 0x979   : > { %v1261_v30 = vmul.f32 %v1257_v40, %v1248_v27 }
 0x97a   : > { %v1233_v31 = vpop.f32.mrf.mxu3 }
 0x97b   : > { %v1265_v32 = vmul.f32 %v1261_v30, %v1248_v27  ;;  %v1234_v34 = vadd.f32 %v1233_v31, %v1197_v29 }
 0x97c   : > { %v1249_v35 = vpop.f32.mrf.mxu0 }
 0x97d   : > { %v1269_v36 = vadd.f32 %v1265_v32, %v1248_v27  ;;  %v1256_v37 = vmul.f32 0.044715, %v1234_v34  ;;  %v1250_v38 = vadd.f32 %v1249_v35, %v1198_v24  ;;  %v1252_v5 = vmul.f32 0.5, %v1234_v34 }
 0x97f   : > { %v1260_v39 = vmul.f32 %v1256_v37, %v1234_v34  ;;  %v1259_v33 = vmul.f32 0.044715, %v1250_v38  ;;  %v1273_v41 = vmul.f32 0.7978846, %v1269_v36  ;;  %v1255_v43 = vmul.f32 0.5, %v1250_v38 }
 0x981   : > { %v1264_v42 = vmul.f32 %v1260_v39, %v1234_v34  ;;  %v1263_v44 = vmul.f32 %v1259_v33, %v1250_v38  ;;  %2097 = vtanh.f32 %v1273_v41 }
 0x982   : > { %v1235_v45 = vpop.f32.mrf.mxu3 }
 0x983   : > { %v1268_v46 = vadd.f32 %v1264_v42, %v1234_v34  ;;  %v1267_v47 = vmul.f32 %v1263_v44, %v1250_v38  ;;  %v1236_v48 = vadd.f32 %v1235_v45, %v1197_v29  ;;  %v1487_v44 = vperm.slane %v2637_v62, 4 }
 0x985   : > { %v1271_v49 = vadd.f32 %v1267_v47, %v1250_v38  ;;  %v1258_v50 = vmul.f32 0.044715, %v1236_v48  ;;  %v1272_v51 = vmul.f32 0.7978846, %v1268_v46  ;;  %v1254_v8 = vmul.f32 0.5, %v1236_v48 }
 0x987   : > { %v1275_v52 = vmul.f32 0.7978846, %v1271_v49  ;;  %v1262_v53 = vmul.f32 %v1258_v50, %v1236_v48  ;;  %v2098_v55 = vpop.eup %2097 }
 0x988   : > { %v1281_v58 = vadd.f32 1.0, %v2098_v55 }
 0x989   : > { %v1266_v54 = vmul.f32 %v1262_v53, %v1236_v48  ;;  %2099 = vtanh.f32 %v1275_v52 }
 0x98a   : > { %2101 = vtanh.f32 %v1272_v51  ;;  %v1285_v1 = vmul.f32 %v1281_v58, %v1253_v61 }
 0x98b   : > { %v1270_v56 = vadd.f32 %v1266_v54, %v1236_v48 }
 0x98d   : > { %v1274_v57 = vmul.f32 0.7978846, %v1270_v56 }
 0x98f   : > { %v2100_v59 = vpop.eup %2099  ;;  %2103 = vtanh.f32 %v1274_v57 }
 0x990   : > { %v1283_v0 = vadd.f32 1.0, %v2100_v59  ;;  %v2102_v7 = vpop.eup %2101 }
 0x991   : > { %v1280_v3 = vadd.f32 1.0, %v2102_v7 }
 0x992   : > { %v1287_v6 = vmul.f32 %v1283_v0, %v1255_v43 }
 0x993   : > { %v1284_v10 = vmul.f32 %v1280_v3, %v1252_v5 }
 0x994   : > { %v1289_v2 = vpack.c.bf16 %v1287_v6, %v1285_v1 }
 0x995   : > { %v2104_v4 = vpop.eup %2103 }
 0x996   : > { %1441 = vmatmul.bf16.vlgmr.msrb.gmra.mxu0 %v1289_v2  ;;  %v1282_v9 = vadd.f32 1.0, %v2104_v4 }
 0x998   : > { %v1286_v11 = vmul.f32 %v1282_v9, %v1254_v8 }
 0x99a   : > { %v1288_v13 = vpack.c.bf16 %v1286_v11, %v1284_v10 }
 0x99c   : > { %1427 = vmatmul.bf16.vlgmr.msra.gmra.mxu3 %v1288_v13 }
 0xa13   : > { %v1442_v60 = vpop.f32.mrf.mxu0 }
 0xa1b   : > { %v1444_v19 = vpop.f32.mrf.mxu0 }
 0xa1f   : > { %v1428_v15 = vpop.f32.mrf.mxu3 }
 0xa20   : > { %v1429_v16 = vadd.f32 %v1428_v15, %v1322_v14 }
 0xa22   : > { %v1443_v63 = vadd.f32 %v1442_v60, %v1429_v16 }
 0xa24   : > { %1447 = vadd.xlane.f32.xlu1 %v1443_v63 }
 0xa27   : > { %v1430_v17 = vpop.f32.mrf.mxu3 }
 0xa28   : > { %v1431_v18 = vadd.f32 %v1430_v17, %v1322_v14 }
 0xa2a   : > { %v1445_v20 = vadd.f32 %v1444_v19, %v1431_v18 }
 0xa2c   : > { %1449 = vadd.xlane.f32.xlu2 %v1445_v20 }
 0xa97   : > { %v1448_v21 = vpop.xlane.xlu1 %1447 }
 0xa98   : > { %v1451_v22 = vmul.f32 %v1448_v21, %v2642_v12 }
 0xa9a   : > { %v1453_v23 = vsub.f32 %v1443_v63, %v1451_v22 }
 0xa9c   : > { %v1455_v24 = vmul.f32 %v1453_v23, %v1453_v23 }
 0xa9e   : > { %1457 = vadd.xlane.f32.xlu0 %v1455_v24 }
 0xa9f   : > { %v1450_v25 = vpop.xlane.xlu2 %1449 }
 0xaa0   : > { %v1452_v26 = vmul.f32 %v1450_v25, %v2642_v12 }
 0xaa2   : > { %v1454_v27 = vsub.f32 %v1445_v20, %v1452_v26 }
 0xaa4   : > { %v1456_v28 = vmul.f32 %v1454_v27, %v1454_v27 }
 0xaa6   : > { %1459 = vadd.xlane.f32.xlu1 %v1456_v28 }
 0xb11   : > { %v1458_v40 = vpop.xlane.xlu0 %1457 }
 0xb12   : > { %v1461_v29 = vmul.f32 %v1458_v40, %v2642_v12 }
 0xb14   : > { %v1463_v30 = vadd.f32 1e-12, %v1461_v29 }
 0xb16   : > { %2105 = vrsqrt.f32 %v1463_v30  ;;  %vm1471_vm12 = vweird.f32 %v1463_v30 }
 0xb19   : > { %v1460_v31 = vpop.xlane.xlu1 %1459 }
 0xb1a   : > { %v1462_v32 = vmul.f32 %v1460_v31, %v2642_v12  ;;  %v1490_v12 = vperm.slane %v2637_v62, 5 }
 0xb1c   : > { %v2106_v34 = vpop.eup %2105  ;;  %v1464_v35 = vadd.f32 1e-12, %v1462_v32 }
 0xb1d   : > { %v1466_v36 = vmul.f32 %v2106_v34, %v1463_v30  ;;  %vm1472_vm11 = vweird.f32 %v2106_v34 }
 0xb1e   : > { %2107 = vrsqrt.f32 %v1464_v35  ;;  %vm1473_vm13 = vmor %vm1471_vm12, %vm1472_vm11  ;;  %vm1481_vm15 = vweird.f32 %v1464_v35 }
 0xb1f   : > { %v1467_v37 = vmul.f32 %v2106_v34, %v1466_v36 }
 0xb21   : > { %v1468_v38 = vmul.f32 0.5, %v1467_v37 }
 0xb23   : > { %v1469_v39 = vsub.f32 1.5, %v1468_v38 }
 0xb24   : > { %v2108_v33 = vpop.eup %2107 }
 0xb25   : > { %v1470_v41 = vmul.f32 %v2106_v34, %v1469_v39  ;;  %v1476_v42 = vmul.f32 %v2108_v33, %v1464_v35  ;;  %vm1482_vm14 = vweird.f32 %v2108_v33 }
 0xb26   : > { %vm1483_vm0 = vmor %vm1481_vm15, %vm1482_vm14 }
 0xb27   : > { %v1474_v45 = vsel %vm1473_vm13, %v2106_v34, %v1470_v41  ;;  %v1477_v46 = vmul.f32 %v2108_v33, %v1476_v42 }
 0xb28   : > { %v1485_v47 = vmul.f32 %v1474_v45, %v1453_v23 }
 0xb29   : > { %v1478_v48 = vmul.f32 0.5, %v1477_v46 }
 0xb2a   : > { %v1488_v49 = vmul.f32 %v1487_v44, %v1485_v47 }
 0xb2b   : > { %v1479_v50 = vsub.f32 1.5, %v1478_v48 }
 0xb2c   : > { %v1491_v51 = vadd.f32 %v1490_v12, %v1488_v49 }
 0xb2d   : > { %v1480_v52 = vmul.f32 %v2108_v33, %v1479_v50 }
 0xb2e   : > { %1493 = vst [vmem:[%s440_s23] sm:$0xff] %v1491_v51 }
 0xb2f   : > { %v1484_v62 = vsel %vm1483_vm0, %v2108_v33, %v1480_v52 }
 0xb30   : > { %v1486_v53 = vmul.f32 %v1484_v62, %v1454_v27 }
 0xb32   : > { %v1489_v54 = vmul.f32 %v1487_v44, %v1486_v53 }
 0xb34   : > { %v1492_v55 = vadd.f32 %v1490_v12, %v1489_v54 }
 0xb36   : > { %1494 = vst [vmem:[%s440_s23 + $0x8] sm:$0xff] %v1492_v55 }
 0xb37   : > { %2256 = shalt.err (!%p2253_p12)
}
 0xb38   : > { %s2318_s22 = smov 128   ;;  %s2319_s12 = smov 8  }
 0xb39   : > { %1968 = dma.vmem_to_hbm [thread:$0]  (%p2460_p3), %s1509_s7, 256, %s1511_s19, %s1496_s17, %s2318_s22, %s2318_s22, %s2319_s12  }
 0xb3a PF: > { %s1525_s26 = sand.u32 1, %s2291_s13   ;;  %p2749_p13 = scmp.ge.s32.totalorder %s2303_s16, 2 }
 0xb3b   : > { %s1526_s30 = scalar_lea.sflag [#allocation4], %s1525_s26 }
 0xb3c   : > { %p1985_p0 = pnand %p2749_p13, %p2410_p6 }
 0xb3e   : > { %p1986_p5 = pneg %p1985_p0 }
 0xb40   : > { %2286 = dma.done.wait (%p1986_p5), %s1526_s30, 256  }
 0xb41   : > { %2288 = vsyncadd (%p1986_p5), %s1526_s30, 4294967040  ;;  %s2750_s28 = sld [smem:[#allocation15_spill]]  ;;  %p25_p7 = scmp.ge.s32.totalorder %s2447_s2, 4  }
 0xb42   : > { %s2751_s13 = smov %s2295_s14  ;;  %s2752_s14 = smov %s2299_s15 }
 0xb43   : > { %s2754_s16 = smov %s2447_s2  ;;  %27 = sbr.rel (!%p25_p7) target bundleno = 11 (0xb), region = 120 }
 0xb47   : > { %s2753_s15 = smov %s2750_s28 }
 0xb48   :  { %1532 = vsyncpa [#allocation3], 1 }
 0xb49   :  { %1534 = vsyncpa [#allocation3 + $0x1], 1 }
 0xb4a   :  { %1535 = vsyncpa [#allocation6], 1 }
 0xb4b   :  { %1536 = vsyncpa [#allocation9], 1 }
 0xb4c   :  { %1537 = vsyncpa [#allocation4], 1 }
 0xb4d   :  { %1539 = vsyncpa [#allocation4 + $0x1], 1 }

</bundles_post_ra>
